<compile_context>
chip_gen: v5e
topology: v5e:2x2
jax: 0.10.0
libtpu: 0.0.40
codegen_flags: <defaults>
</compile_context>

<pallas_src>
import functools

import jax
import jax.numpy as jnp
from jax import lax
from jax.experimental import pallas as pl
from jax.experimental.pallas import tpu as pltpu


def _layernorm(h, w, b, eps=1e-5):
    mu = jnp.mean(h, axis=-1, keepdims=True)
    d = h - mu
    var = jnp.mean(d * d, axis=-1, keepdims=True)
    return d * lax.rsqrt(var + eps) * w + b


def block_kernel(x_ref, ln1w_ref, ln1b_ref, wq_ref, wk_ref, wv_ref,
                 wproj_ref, bproj_ref, ln2w_ref, ln2b_ref,
                 w1_ref, b1_ref, w2_ref, b2_ref, o_ref,
                 *, n_head, head_size, block_b, seq_len, scale, approx_recip):
    rows = block_b * seq_len
    x = x_ref[...].astype(jnp.float32)                       # (R, C)
    C = x.shape[1]
    cdt = wq_ref.dtype                                       # matmul operand dtype (bf16 or f32)

    # ---- self-attention branch: ln1 -> fused multi-head causal attention -> proj
    h = _layernorm(x, ln1w_ref[...].astype(jnp.float32),
                   ln1b_ref[...].astype(jnp.float32))
    h_c = h.astype(cdt)

    # Causal mask, built once per grid step.
    row_id = lax.broadcasted_iota(jnp.int32, (block_b, seq_len, seq_len), 1)
    col_id = lax.broadcasted_iota(jnp.int32, (block_b, seq_len, seq_len), 2)
    causal = row_id >= col_id

    sa = jnp.zeros((rows, C), jnp.float32)
    for hh in range(n_head):                                 # static unroll over heads
        # Tall-M (R x C x hs) projections from head-major weight stacks; no lane slicing.
        q = jnp.dot(h_c, wq_ref[hh], preferred_element_type=jnp.float32)
        k = jnp.dot(h_c, wk_ref[hh], preferred_element_type=jnp.float32)
        v = jnp.dot(h_c, wv_ref[hh], preferred_element_type=jnp.float32)
        q3 = q.reshape(block_b, seq_len, head_size).astype(cdt)
        k3 = k.reshape(block_b, seq_len, head_size).astype(cdt)
        v3 = v.reshape(block_b, seq_len, head_size).astype(cdt)

        # Scores for every sample in the block at once; K consumed untransposed.
        # NOTE: reference scales by C**-0.5 (n_embed), matching the PyTorch module.
        s = jnp.einsum('bqd,bkd->bqk', q3, k3,
                       preferred_element_type=jnp.float32) * scale
        s = jnp.where(causal, s, -jnp.inf)
        s = s - jnp.max(s, axis=-1, keepdims=True)
        p = jnp.exp(s)
        denom = jnp.sum(p, axis=-1, keepdims=True)
        p = p * pl.reciprocal(denom, approx=approx_recip)

        o3 = jnp.einsum('bqk,bkd->bqd', p.astype(cdt), v3,
                        preferred_element_type=jnp.float32)
        o2 = o3.reshape(rows, head_size).astype(cdt)
        # Accumulate the output projection per head -> no lane-axis concatenate.
        sa = sa + jnp.dot(o2, wproj_ref[hh], preferred_element_type=jnp.float32)

    sa = sa + bproj_ref[...].astype(jnp.float32)
    x1 = x + sa

    # ---- feed-forward branch: ln2 -> Linear(4C) -> ReLU -> Linear(C) ----
    h2 = _layernorm(x1, ln2w_ref[...].astype(jnp.float32),
                    ln2b_ref[...].astype(jnp.float32))
    ff = jnp.dot(h2.astype(cdt), w1_ref[...],
                 preferred_element_type=jnp.float32) + b1_ref[...].astype(jnp.float32)
    ff = jnp.maximum(ff, 0.0)
    ff = jnp.dot(ff.astype(cdt), w2_ref[...],
                 preferred_element_type=jnp.float32) + b2_ref[...].astype(jnp.float32)

    o_ref[...] = (x1 + ff).astype(o_ref.dtype)


def _pick_block_b(B, T):
    # Aim for ~128 rows per grid step (full MXU M), but keep >= 2 grid steps when
    # possible so both v7x TensorCores get work.
    target = max(1, 128 // max(T, 1))
    if B > 1:
        target = min(target, max(1, B // 2))
    for cand in range(min(B, target), 0, -1):
        if B % cand == 0:
            return cand
    return 1


def block_forward(x, params, *, n_head, compute_dtype=jnp.bfloat16, block_b=None):
    B, T, C = x.shape
    assert C % n_head == 0
    hs = C // n_head
    (ln1w, ln1b, wq, wk, wv, wproj, bproj, ln2w, ln2b, w1, b1, w2, b2) = params

    if block_b is None:
        block_b = _pick_block_b(B, T)
    assert B % block_b == 0
    rows = block_b * T
    grid = (B // block_b,)

    cdt = jnp.dtype(compute_dtype)
    # Head-major weight stacks prepared OUTSIDE the kernel (free): all head
    # splitting of the lane axis happens here, not in the kernel body.
    wq_h = wq.reshape(C, n_head, hs).transpose(1, 0, 2).astype(cdt)    # (H, C, hs)
    wk_h = wk.reshape(C, n_head, hs).transpose(1, 0, 2).astype(cdt)
    wv_h = wv.reshape(C, n_head, hs).transpose(1, 0, 2).astype(cdt)
    wproj_h = wproj.reshape(n_head, hs, C).astype(cdt)                  # (H, hs, C)
    w1c = w1.astype(cdt)
    w2c = w2.astype(cdt)

    x2 = x.reshape(B * T, C)                                            # free reshape

    kernel = functools.partial(
        block_kernel, n_head=n_head, head_size=hs, block_b=block_b,
        seq_len=T, scale=float(C) ** -0.5,
        approx_recip=(cdt != jnp.dtype(jnp.float32)))

    full2 = lambda i: (0, 0)
    full3 = lambda i: (0, 0, 0)

    # Explicit scoped-VMEM budget: resident (double-buffered) weights + activation
    # blocks, capped at 64 MiB so it is valid on v7x as well as v5e/v6e.
    # For very large n_embed on v7x, tile W1/W2 over the 4C axis instead.
    weight_bytes = sum(int(a.size) * a.dtype.itemsize
                       for a in (wq_h, wk_h, wv_h, wproj_h, w1c, w2c,
                                 ln1w, ln1b, bproj, ln2w, ln2b, b1, b2))
    act_bytes = rows * C * x.dtype.itemsize
    need = 2 * weight_bytes + 4 * act_bytes + (8 << 20)
    vmem_limit = int(min(64 << 20, max(need, 16 << 20)))

    out2 = pl.pallas_call(
        kernel,
        out_shape=jax.ShapeDtypeStruct((B * T, C), x.dtype),
        grid_spec=pltpu.PrefetchScalarGridSpec(
            num_scalar_prefetch=0,
            grid=grid,
            in_specs=[
                pl.BlockSpec((rows, C), lambda i: (i, 0)),       # x (flattened B*T rows)
                pl.BlockSpec((1, C), full2),                     # ln1 w
                pl.BlockSpec((1, C), full2),                     # ln1 b
                pl.BlockSpec((n_head, C, hs), full3),            # Wq (head-major)
                pl.BlockSpec((n_head, C, hs), full3),            # Wk
                pl.BlockSpec((n_head, C, hs), full3),            # Wv
                pl.BlockSpec((n_head, hs, C), full3),            # Wproj (head-major)
                pl.BlockSpec((1, C), full2),                     # bproj
                pl.BlockSpec((1, C), full2),                     # ln2 w
                pl.BlockSpec((1, C), full2),                     # ln2 b
                pl.BlockSpec((C, 4 * C), full2),                 # W1
                pl.BlockSpec((1, 4 * C), full2),                 # b1
                pl.BlockSpec((4 * C, C), full2),                 # W2
                pl.BlockSpec((1, C), full2),                     # b2
            ],
            out_specs=pl.BlockSpec((rows, C), lambda i: (i, 0)),
        ),
        compiler_params=pltpu.CompilerParams(
            dimension_semantics=("parallel",),
            vmem_limit_bytes=vmem_limit),
    )(x2, ln1w, ln1b, wq_h, wk_h, wv_h, wproj_h, bproj,
      ln2w, ln2b, w1c, b1, w2c, b2)

    return out2.reshape(B, T, C)


def reference_forward(x, params, *, n_head):
    # Pure-JAX f32 reference (same math) for correctness check.
    B, T, C = x.shape
    hs = C // n_head
    (ln1w, ln1b, wq, wk, wv, wproj, bproj, ln2w, ln2b, w1, b1, w2, b2) = params
    xf = x.astype(jnp.float32)

    def ln(h, w, b):
        mu = h.mean(-1, keepdims=True)
        var = ((h - mu) ** 2).mean(-1, keepdims=True)
        return (h - mu) / jnp.sqrt(var + 1e-5) * w + b

    h = ln(xf, ln1w, ln1b)
    q, k, v = h @ wq, h @ wk, h @ wv
    mask = jnp.tril(jnp.ones((T, T), bool))
    outs = []
    for hh in range(n_head):
        sl = slice(hh * hs, (hh + 1) * hs)
        s = q[..., sl] @ jnp.swapaxes(k[..., sl], -1, -2) * (C ** -0.5)
        s = jnp.where(mask, s, -jnp.inf)
        p = jax.nn.softmax(s, axis=-1)
        outs.append(p @ v[..., sl])
    sa = jnp.concatenate(outs, -1) @ wproj + bproj
    x1 = xf + sa
    h2 = ln(x1, ln2w, ln2b)
    ff = jnp.maximum(h2 @ w1 + b1, 0.0) @ w2 + b2
    return (x1 + ff).astype(x.dtype)


def init_params(key, n_embed, n_head):
    C = n_embed
    ks = jax.random.split(key, 8)
    s = 0.02
    ln1w = jnp.ones((1, C), jnp.float32)
    ln1b = jnp.zeros((1, C), jnp.float32)
    wq = s * jax.random.normal(ks[0], (C, C), jnp.float32)
    wk = s * jax.random.normal(ks[1], (C, C), jnp.float32)
    wv = s * jax.random.normal(ks[2], (C, C), jnp.float32)
    wproj = s * jax.random.normal(ks[3], (C, C), jnp.float32)
    bproj = s * jax.random.normal(ks[4], (1, C), jnp.float32)
    ln2w = jnp.ones((1, C), jnp.float32)
    ln2b = jnp.zeros((1, C), jnp.float32)
    w1 = s * jax.random.normal(ks[5], (C, 4 * C), jnp.float32)
    b1 = s * jax.random.normal(ks[6], (1, 4 * C), jnp.float32)
    w2 = s * jax.random.normal(ks[7], (4 * C, C), jnp.float32)
    b2 = jnp.zeros((1, C), jnp.float32)
    return (ln1w, ln1b, wq, wk, wv, wproj, bproj, ln2w, ln2b, w1, b1, w2, b2)


if __name__ == "__main__":
    B, T, n_embed, n_head = 4, 8, 32, 4        # BLOCK_SIZE == T == 8
    key = jax.random.PRNGKey(0)
    kx, kp = jax.random.split(key)
    x = jax.random.normal(kx, (B, T, n_embed), jnp.float32)
    params = init_params(kp, n_embed, n_head)

    ref = reference_forward(x, params, n_head=n_head)

    # Exact-math path (f32 operands, exact reciprocal) -> tight tolerance.
    out_f32 = jax.block_until_ready(
        block_forward(x, params, n_head=n_head, compute_dtype=jnp.float32))
    assert out_f32.shape == (B, T, n_embed)
    assert jnp.allclose(out_f32, ref, atol=1e-4, rtol=1e-4)

    # Default fast path (bf16 MXU operands, f32 accumulation, approx reciprocal).
    out_bf16 = jax.block_until_ready(block_forward(x, params, n_head=n_head))
    assert out_bf16.shape == (B, T, n_embed)
    assert jnp.allclose(out_bf16, ref, atol=1e-2, rtol=1e-2)

    print("KERNEL_OK")
</pallas_src>

<mosaic_0001>
module attributes {stable_mosaic.version = 11 : i64} {
  func.func @block_kernel(%arg0: i32, %arg1: memref<16x32xf32, #tpu.memory_space<vmem>>, %arg2: memref<1x32xf32, #tpu.memory_space<vmem>>, %arg3: memref<1x32xf32, #tpu.memory_space<vmem>>, %arg4: memref<4x32x8xf32, #tpu.memory_space<vmem>>, %arg5: memref<4x32x8xf32, #tpu.memory_space<vmem>>, %arg6: memref<4x32x8xf32, #tpu.memory_space<vmem>>, %arg7: memref<4x8x32xf32, #tpu.memory_space<vmem>>, %arg8: memref<1x32xf32, #tpu.memory_space<vmem>>, %arg9: memref<1x32xf32, #tpu.memory_space<vmem>>, %arg10: memref<1x32xf32, #tpu.memory_space<vmem>>, %arg11: memref<32x128xf32, #tpu.memory_space<vmem>>, %arg12: memref<1x128xf32, #tpu.memory_space<vmem>>, %arg13: memref<128x32xf32, #tpu.memory_space<vmem>>, %arg14: memref<1x32xf32, #tpu.memory_space<vmem>>, %arg15: memref<16x32xf32, #tpu.memory_space<vmem>>) attributes {dimension_semantics = [#tpu.dimension_semantics<parallel>], iteration_bounds = array<i64: 2>, scalar_prefetch = 0 : i64, scratch_operands = 0 : i64, tpu.core_type = #tpu.core_type<tc>, window_params = [{transform_indices = @transform_0, window_bounds = array<i64: 16, 32>}, {pipeline_mode = #tpu.pipeline_mode<synchronous>, transform_indices = @transform_1, window_bounds = array<i64: 1, 32>}, {pipeline_mode = #tpu.pipeline_mode<synchronous>, transform_indices = @transform_2, window_bounds = array<i64: 1, 32>}, {pipeline_mode = #tpu.pipeline_mode<synchronous>, transform_indices = @transform_3, window_bounds = array<i64: 4, 32, 8>}, {pipeline_mode = #tpu.pipeline_mode<synchronous>, transform_indices = @transform_4, window_bounds = array<i64: 4, 32, 8>}, {pipeline_mode = #tpu.pipeline_mode<synchronous>, transform_indices = @transform_5, window_bounds = array<i64: 4, 32, 8>}, {pipeline_mode = #tpu.pipeline_mode<synchronous>, transform_indices = @transform_6, window_bounds = array<i64: 4, 8, 32>}, {pipeline_mode = #tpu.pipeline_mode<synchronous>, transform_indices = @transform_7, window_bounds = array<i64: 1, 32>}, {pipeline_mode = #tpu.pipeline_mode<synchronous>, transform_indices = @transform_8, window_bounds = array<i64: 1, 32>}, {pipeline_mode = #tpu.pipeline_mode<synchronous>, transform_indices = @transform_9, window_bounds = array<i64: 1, 32>}, {pipeline_mode = #tpu.pipeline_mode<synchronous>, transform_indices = @transform_10, window_bounds = array<i64: 32, 128>}, {pipeline_mode = #tpu.pipeline_mode<synchronous>, transform_indices = @transform_11, window_bounds = array<i64: 1, 128>}, {pipeline_mode = #tpu.pipeline_mode<synchronous>, transform_indices = @transform_12, window_bounds = array<i64: 128, 32>}, {pipeline_mode = #tpu.pipeline_mode<synchronous>, transform_indices = @transform_13, window_bounds = array<i64: 1, 32>}, {transform_indices = @transform_14, window_bounds = array<i64: 16, 32>}]} {
    %c0 = arith.constant 0 : index
    %c0_0 = arith.constant 0 : index
    %0 = vector.load %arg1[%c0, %c0_0] : memref<16x32xf32, #tpu.memory_space<vmem>>, vector<16x32xf32>
    %c0_1 = arith.constant 0 : index
    %c0_2 = arith.constant 0 : index
    %1 = vector.load %arg2[%c0_1, %c0_2] : memref<1x32xf32, #tpu.memory_space<vmem>>, vector<1x32xf32>
    %c0_3 = arith.constant 0 : index
    %c0_4 = arith.constant 0 : index
    %2 = vector.load %arg3[%c0_3, %c0_4] : memref<1x32xf32, #tpu.memory_space<vmem>>, vector<1x32xf32>
    %cst = arith.constant dense<0.000000e+00> : vector<16xf32>
    %3 = vector.multi_reduction <add>, %0, %cst [1] : vector<16x32xf32> to vector<16xf32>
    %4 = vector.shape_cast %3 : vector<16xf32> to vector<16x1xf32>
    %cst_5 = arith.constant 3.200000e+01 : f32
    %5 = vector.broadcast %cst_5 : f32 to vector<16x1xf32>
    %6 = arith.divf %4, %5 : vector<16x1xf32>
    %7 = vector.broadcast %6 : vector<16x1xf32> to vector<16x32xf32>
    %8 = arith.subf %0, %7 : vector<16x32xf32>
    %9 = arith.mulf %8, %8 : vector<16x32xf32>
    %cst_6 = arith.constant dense<0.000000e+00> : vector<16xf32>
    %10 = vector.multi_reduction <add>, %9, %cst_6 [1] : vector<16x32xf32> to vector<16xf32>
    %11 = vector.shape_cast %10 : vector<16xf32> to vector<16x1xf32>
    %cst_7 = arith.constant 3.200000e+01 : f32
    %12 = vector.broadcast %cst_7 : f32 to vector<16x1xf32>
    %13 = arith.divf %11, %12 : vector<16x1xf32>
    %cst_8 = arith.constant 9.99999974E-6 : f32
    %14 = vector.broadcast %cst_8 : f32 to vector<16x1xf32>
    %15 = arith.addf %13, %14 : vector<16x1xf32>
    %16 = math.rsqrt %15 : vector<16x1xf32>
    %17 = vector.broadcast %16 : vector<16x1xf32> to vector<16x32xf32>
    %18 = arith.mulf %8, %17 : vector<16x32xf32>
    %19 = vector.broadcast %1 : vector<1x32xf32> to vector<16x32xf32>
    %20 = arith.mulf %18, %19 : vector<16x32xf32>
    %21 = vector.broadcast %2 : vector<1x32xf32> to vector<16x32xf32>
    %22 = arith.addf %20, %21 : vector<16x32xf32>
    %23 = tpu.iota {dimensions = array<i32: 1>} : vector<2x8x8xi32>
    %24 = tpu.iota {dimensions = array<i32: 2>} : vector<2x8x8xi32>
    %25 = arith.cmpi sge, %23, %24 : vector<2x8x8xi32>
    %cst_9 = arith.constant 0.000000e+00 : f32
    %26 = vector.broadcast %cst_9 : f32 to vector<16x32xf32>
    %c0_10 = arith.constant 0 : index
    %c0_11 = arith.constant 0 : index
    %c0_12 = arith.constant 0 : index
    %27 = vector.load %arg4[%c0_10, %c0_11, %c0_12] : memref<4x32x8xf32, #tpu.memory_space<vmem>>, vector<1x32x8xf32>
    %28 = vector.shape_cast %27 : vector<1x32x8xf32> to vector<32x8xf32>
    %cst_13 = arith.constant dense<0.000000e+00> : vector<16x8xf32>
    %29 = tpu.matmul %22, %28, %cst_13 {dimension_numbers = #tpu.dot_dimension_numbers<[1], [0], [0], [1], [0, 0, 1, 1], [], []>} : vector<16x32xf32>, vector<32x8xf32>, vector<16x8xf32> -> vector<16x8xf32>
    %c0_14 = arith.constant 0 : index
    %c0_15 = arith.constant 0 : index
    %c0_16 = arith.constant 0 : index
    %30 = vector.load %arg5[%c0_14, %c0_15, %c0_16] : memref<4x32x8xf32, #tpu.memory_space<vmem>>, vector<1x32x8xf32>
    %31 = vector.shape_cast %30 : vector<1x32x8xf32> to vector<32x8xf32>
    %cst_17 = arith.constant dense<0.000000e+00> : vector<16x8xf32>
    %32 = tpu.matmul %22, %31, %cst_17 {dimension_numbers = #tpu.dot_dimension_numbers<[1], [0], [0], [1], [0, 0, 1, 1], [], []>} : vector<16x32xf32>, vector<32x8xf32>, vector<16x8xf32> -> vector<16x8xf32>
    %c0_18 = arith.constant 0 : index
    %c0_19 = arith.constant 0 : index
    %c0_20 = arith.constant 0 : index
    %33 = vector.load %arg6[%c0_18, %c0_19, %c0_20] : memref<4x32x8xf32, #tpu.memory_space<vmem>>, vector<1x32x8xf32>
    %34 = vector.shape_cast %33 : vector<1x32x8xf32> to vector<32x8xf32>
    %cst_21 = arith.constant dense<0.000000e+00> : vector<16x8xf32>
    %35 = tpu.matmul %22, %34, %cst_21 {dimension_numbers = #tpu.dot_dimension_numbers<[1], [0], [0], [1], [0, 0, 1, 1], [], []>} : vector<16x32xf32>, vector<32x8xf32>, vector<16x8xf32> -> vector<16x8xf32>
    %36 = vector.shape_cast %29 : vector<16x8xf32> to vector<2x8x8xf32>
    %37 = vector.shape_cast %32 : vector<16x8xf32> to vector<2x8x8xf32>
    %38 = vector.shape_cast %35 : vector<16x8xf32> to vector<2x8x8xf32>
    "tpu.trace_start"() <{level = 10 : i32, message = "bqd,bkd->bqk"}> : () -> ()
    %cst_22 = arith.constant dense<0.000000e+00> : vector<2x8x8xf32>
    %39 = tpu.matmul %36, %37, %cst_22 {dimension_numbers = #tpu.dot_dimension_numbers<[2], [2], [1], [1], [0, 0, 0, 1, 1, 1], [0], [0]>} : vector<2x8x8xf32>, vector<2x8x8xf32>, vector<2x8x8xf32> -> vector<2x8x8xf32>
    "tpu.trace_stop"() : () -> ()
    %cst_23 = arith.constant 0.176776692 : f32
    %40 = vector.broadcast %cst_23 : f32 to vector<2x8x8xf32>
    %41 = arith.mulf %39, %40 : vector<2x8x8xf32>
    %cst_24 = arith.constant 0xFF800000 : f32
    %42 = vector.broadcast %cst_24 : f32 to vector<2x8x8xf32>
    %43 = arith.select %25, %41, %42 : vector<2x8x8xi1>, vector<2x8x8xf32>
    %cst_25 = arith.constant dense<0xFF800000> : vector<2x8xf32>
    %44 = vector.multi_reduction <maximumf>, %43, %cst_25 [2] : vector<2x8x8xf32> to vector<2x8xf32>
    %45 = vector.shape_cast %44 : vector<2x8xf32> to vector<2x8x1xf32>
    %46 = vector.broadcast %45 : vector<2x8x1xf32> to vector<2x8x8xf32>
    %47 = arith.subf %43, %46 : vector<2x8x8xf32>
    %48 = math.exp %47 : vector<2x8x8xf32>
    %cst_26 = arith.constant dense<0.000000e+00> : vector<2x8xf32>
    %49 = vector.multi_reduction <add>, %48, %cst_26 [2] : vector<2x8x8xf32> to vector<2x8xf32>
    %50 = vector.shape_cast %49 : vector<2x8xf32> to vector<2x8x1xf32>
    %51 = tpu.reciprocal %50 : vector<2x8x1xf32> -> vector<2x8x1xf32>
    %52 = vector.broadcast %51 : vector<2x8x1xf32> to vector<2x8x8xf32>
    %53 = arith.mulf %48, %52 : vector<2x8x8xf32>
    "tpu.trace_start"() <{level = 10 : i32, message = "bqk,bkd->bqd"}> : () -> ()
    %cst_27 = arith.constant dense<0.000000e+00> : vector<2x8x8xf32>
    %54 = tpu.matmul %53, %38, %cst_27 {dimension_numbers = #tpu.dot_dimension_numbers<[2], [1], [1], [2], [0, 0, 0, 1, 1, 2], [0], [0]>} : vector<2x8x8xf32>, vector<2x8x8xf32>, vector<2x8x8xf32> -> vector<2x8x8xf32>
    "tpu.trace_stop"() : () -> ()
    %55 = vector.shape_cast %54 : vector<2x8x8xf32> to vector<16x8xf32>
    %c0_28 = arith.constant 0 : index
    %c0_29 = arith.constant 0 : index
    %c0_30 = arith.constant 0 : index
    %56 = vector.load %arg7[%c0_28, %c0_29, %c0_30] : memref<4x8x32xf32, #tpu.memory_space<vmem>>, vector<1x8x32xf32>
    %57 = vector.shape_cast %56 : vector<1x8x32xf32> to vector<8x32xf32>
    %cst_31 = arith.constant dense<0.000000e+00> : vector<16x32xf32>
    %58 = tpu.matmul %55, %57, %cst_31 {dimension_numbers = #tpu.dot_dimension_numbers<[1], [0], [0], [1], [0, 0, 1, 1], [], []>} : vector<16x8xf32>, vector<8x32xf32>, vector<16x32xf32> -> vector<16x32xf32>
    %59 = arith.addf %26, %58 : vector<16x32xf32>
    %c1 = arith.constant 1 : index
    %c0_32 = arith.constant 0 : index
    %c0_33 = arith.constant 0 : index
    %60 = vector.load %arg4[%c1, %c0_32, %c0_33] : memref<4x32x8xf32, #tpu.memory_space<vmem>>, vector<1x32x8xf32>
    %61 = vector.shape_cast %60 : vector<1x32x8xf32> to vector<32x8xf32>
    %cst_34 = arith.constant dense<0.000000e+00> : vector<16x8xf32>
    %62 = tpu.matmul %22, %61, %cst_34 {dimension_numbers = #tpu.dot_dimension_numbers<[1], [0], [0], [1], [0, 0, 1, 1], [], []>} : vector<16x32xf32>, vector<32x8xf32>, vector<16x8xf32> -> vector<16x8xf32>
    %c1_35 = arith.constant 1 : index
    %c0_36 = arith.constant 0 : index
    %c0_37 = arith.constant 0 : index
    %63 = vector.load %arg5[%c1_35, %c0_36, %c0_37] : memref<4x32x8xf32, #tpu.memory_space<vmem>>, vector<1x32x8xf32>
    %64 = vector.shape_cast %63 : vector<1x32x8xf32> to vector<32x8xf32>
    %cst_38 = arith.constant dense<0.000000e+00> : vector<16x8xf32>
    %65 = tpu.matmul %22, %64, %cst_38 {dimension_numbers = #tpu.dot_dimension_numbers<[1], [0], [0], [1], [0, 0, 1, 1], [], []>} : vector<16x32xf32>, vector<32x8xf32>, vector<16x8xf32> -> vector<16x8xf32>
    %c1_39 = arith.constant 1 : index
    %c0_40 = arith.constant 0 : index
    %c0_41 = arith.constant 0 : index
    %66 = vector.load %arg6[%c1_39, %c0_40, %c0_41] : memref<4x32x8xf32, #tpu.memory_space<vmem>>, vector<1x32x8xf32>
    %67 = vector.shape_cast %66 : vector<1x32x8xf32> to vector<32x8xf32>
    %cst_42 = arith.constant dense<0.000000e+00> : vector<16x8xf32>
    %68 = tpu.matmul %22, %67, %cst_42 {dimension_numbers = #tpu.dot_dimension_numbers<[1], [0], [0], [1], [0, 0, 1, 1], [], []>} : vector<16x32xf32>, vector<32x8xf32>, vector<16x8xf32> -> vector<16x8xf32>
    %69 = vector.shape_cast %62 : vector<16x8xf32> to vector<2x8x8xf32>
    %70 = vector.shape_cast %65 : vector<16x8xf32> to vector<2x8x8xf32>
    %71 = vector.shape_cast %68 : vector<16x8xf32> to vector<2x8x8xf32>
    "tpu.trace_start"() <{level = 10 : i32, message = "bqd,bkd->bqk"}> : () -> ()
    %cst_43 = arith.constant dense<0.000000e+00> : vector<2x8x8xf32>
    %72 = tpu.matmul %69, %70, %cst_43 {dimension_numbers = #tpu.dot_dimension_numbers<[2], [2], [1], [1], [0, 0, 0, 1, 1, 1], [0], [0]>} : vector<2x8x8xf32>, vector<2x8x8xf32>, vector<2x8x8xf32> -> vector<2x8x8xf32>
    "tpu.trace_stop"() : () -> ()
    %cst_44 = arith.constant 0.176776692 : f32
    %73 = vector.broadcast %cst_44 : f32 to vector<2x8x8xf32>
    %74 = arith.mulf %72, %73 : vector<2x8x8xf32>
    %cst_45 = arith.constant 0xFF800000 : f32
    %75 = vector.broadcast %cst_45 : f32 to vector<2x8x8xf32>
    %76 = arith.select %25, %74, %75 : vector<2x8x8xi1>, vector<2x8x8xf32>
    %cst_46 = arith.constant dense<0xFF800000> : vector<2x8xf32>
    %77 = vector.multi_reduction <maximumf>, %76, %cst_46 [2] : vector<2x8x8xf32> to vector<2x8xf32>
    %78 = vector.shape_cast %77 : vector<2x8xf32> to vector<2x8x1xf32>
    %79 = vector.broadcast %78 : vector<2x8x1xf32> to vector<2x8x8xf32>
    %80 = arith.subf %76, %79 : vector<2x8x8xf32>
    %81 = math.exp %80 : vector<2x8x8xf32>
    %cst_47 = arith.constant dense<0.000000e+00> : vector<2x8xf32>
    %82 = vector.multi_reduction <add>, %81, %cst_47 [2] : vector<2x8x8xf32> to vector<2x8xf32>
    %83 = vector.shape_cast %82 : vector<2x8xf32> to vector<2x8x1xf32>
    %84 = tpu.reciprocal %83 : vector<2x8x1xf32> -> vector<2x8x1xf32>
    %85 = vector.broadcast %84 : vector<2x8x1xf32> to vector<2x8x8xf32>
    %86 = arith.mulf %81, %85 : vector<2x8x8xf32>
    "tpu.trace_start"() <{level = 10 : i32, message = "bqk,bkd->bqd"}> : () -> ()
    %cst_48 = arith.constant dense<0.000000e+00> : vector<2x8x8xf32>
    %87 = tpu.matmul %86, %71, %cst_48 {dimension_numbers = #tpu.dot_dimension_numbers<[2], [1], [1], [2], [0, 0, 0, 1, 1, 2], [0], [0]>} : vector<2x8x8xf32>, vector<2x8x8xf32>, vector<2x8x8xf32> -> vector<2x8x8xf32>
    "tpu.trace_stop"() : () -> ()
    %88 = vector.shape_cast %87 : vector<2x8x8xf32> to vector<16x8xf32>
    %c1_49 = arith.constant 1 : index
    %c0_50 = arith.constant 0 : index
    %c0_51 = arith.constant 0 : index
    %89 = vector.load %arg7[%c1_49, %c0_50, %c0_51] : memref<4x8x32xf32, #tpu.memory_space<vmem>>, vector<1x8x32xf32>
    %90 = vector.shape_cast %89 : vector<1x8x32xf32> to vector<8x32xf32>
    %cst_52 = arith.constant dense<0.000000e+00> : vector<16x32xf32>
    %91 = tpu.matmul %88, %90, %cst_52 {dimension_numbers = #tpu.dot_dimension_numbers<[1], [0], [0], [1], [0, 0, 1, 1], [], []>} : vector<16x8xf32>, vector<8x32xf32>, vector<16x32xf32> -> vector<16x32xf32>
    %92 = arith.addf %59, %91 : vector<16x32xf32>
    %c2 = arith.constant 2 : index
    %c0_53 = arith.constant 0 : index
    %c0_54 = arith.constant 0 : index
    %93 = vector.load %arg4[%c2, %c0_53, %c0_54] : memref<4x32x8xf32, #tpu.memory_space<vmem>>, vector<1x32x8xf32>
    %94 = vector.shape_cast %93 : vector<1x32x8xf32> to vector<32x8xf32>
    %cst_55 = arith.constant dense<0.000000e+00> : vector<16x8xf32>
    %95 = tpu.matmul %22, %94, %cst_55 {dimension_numbers = #tpu.dot_dimension_numbers<[1], [0], [0], [1], [0, 0, 1, 1], [], []>} : vector<16x32xf32>, vector<32x8xf32>, vector<16x8xf32> -> vector<16x8xf32>
    %c2_56 = arith.constant 2 : index
    %c0_57 = arith.constant 0 : index
    %c0_58 = arith.constant 0 : index
    %96 = vector.load %arg5[%c2_56, %c0_57, %c0_58] : memref<4x32x8xf32, #tpu.memory_space<vmem>>, vector<1x32x8xf32>
    %97 = vector.shape_cast %96 : vector<1x32x8xf32> to vector<32x8xf32>
    %cst_59 = arith.constant dense<0.000000e+00> : vector<16x8xf32>
    %98 = tpu.matmul %22, %97, %cst_59 {dimension_numbers = #tpu.dot_dimension_numbers<[1], [0], [0], [1], [0, 0, 1, 1], [], []>} : vector<16x32xf32>, vector<32x8xf32>, vector<16x8xf32> -> vector<16x8xf32>
    %c2_60 = arith.constant 2 : index
    %c0_61 = arith.constant 0 : index
    %c0_62 = arith.constant 0 : index
    %99 = vector.load %arg6[%c2_60, %c0_61, %c0_62] : memref<4x32x8xf32, #tpu.memory_space<vmem>>, vector<1x32x8xf32>
    %100 = vector.shape_cast %99 : vector<1x32x8xf32> to vector<32x8xf32>
    %cst_63 = arith.constant dense<0.000000e+00> : vector<16x8xf32>
    %101 = tpu.matmul %22, %100, %cst_63 {dimension_numbers = #tpu.dot_dimension_numbers<[1], [0], [0], [1], [0, 0, 1, 1], [], []>} : vector<16x32xf32>, vector<32x8xf32>, vector<16x8xf32> -> vector<16x8xf32>
    %102 = vector.shape_cast %95 : vector<16x8xf32> to vector<2x8x8xf32>
    %103 = vector.shape_cast %98 : vector<16x8xf32> to vector<2x8x8xf32>
    %104 = vector.shape_cast %101 : vector<16x8xf32> to vector<2x8x8xf32>
    "tpu.trace_start"() <{level = 10 : i32, message = "bqd,bkd->bqk"}> : () -> ()
    %cst_64 = arith.constant dense<0.000000e+00> : vector<2x8x8xf32>
    %105 = tpu.matmul %102, %103, %cst_64 {dimension_numbers = #tpu.dot_dimension_numbers<[2], [2], [1], [1], [0, 0, 0, 1, 1, 1], [0], [0]>} : vector<2x8x8xf32>, vector<2x8x8xf32>, vector<2x8x8xf32> -> vector<2x8x8xf32>
    "tpu.trace_stop"() : () -> ()
    %cst_65 = arith.constant 0.176776692 : f32
    %106 = vector.broadcast %cst_65 : f32 to vector<2x8x8xf32>
    %107 = arith.mulf %105, %106 : vector<2x8x8xf32>
    %cst_66 = arith.constant 0xFF800000 : f32
    %108 = vector.broadcast %cst_66 : f32 to vector<2x8x8xf32>
    %109 = arith.select %25, %107, %108 : vector<2x8x8xi1>, vector<2x8x8xf32>
    %cst_67 = arith.constant dense<0xFF800000> : vector<2x8xf32>
    %110 = vector.multi_reduction <maximumf>, %109, %cst_67 [2] : vector<2x8x8xf32> to vector<2x8xf32>
    %111 = vector.shape_cast %110 : vector<2x8xf32> to vector<2x8x1xf32>
    %112 = vector.broadcast %111 : vector<2x8x1xf32> to vector<2x8x8xf32>
    %113 = arith.subf %109, %112 : vector<2x8x8xf32>
    %114 = math.exp %113 : vector<2x8x8xf32>
    %cst_68 = arith.constant dense<0.000000e+00> : vector<2x8xf32>
    %115 = vector.multi_reduction <add>, %114, %cst_68 [2] : vector<2x8x8xf32> to vector<2x8xf32>
    %116 = vector.shape_cast %115 : vector<2x8xf32> to vector<2x8x1xf32>
    %117 = tpu.reciprocal %116 : vector<2x8x1xf32> -> vector<2x8x1xf32>
    %118 = vector.broadcast %117 : vector<2x8x1xf32> to vector<2x8x8xf32>
    %119 = arith.mulf %114, %118 : vector<2x8x8xf32>
    "tpu.trace_start"() <{level = 10 : i32, message = "bqk,bkd->bqd"}> : () -> ()
    %cst_69 = arith.constant dense<0.000000e+00> : vector<2x8x8xf32>
    %120 = tpu.matmul %119, %104, %cst_69 {dimension_numbers = #tpu.dot_dimension_numbers<[2], [1], [1], [2], [0, 0, 0, 1, 1, 2], [0], [0]>} : vector<2x8x8xf32>, vector<2x8x8xf32>, vector<2x8x8xf32> -> vector<2x8x8xf32>
    "tpu.trace_stop"() : () -> ()
    %121 = vector.shape_cast %120 : vector<2x8x8xf32> to vector<16x8xf32>
    %c2_70 = arith.constant 2 : index
    %c0_71 = arith.constant 0 : index
    %c0_72 = arith.constant 0 : index
    %122 = vector.load %arg7[%c2_70, %c0_71, %c0_72] : memref<4x8x32xf32, #tpu.memory_space<vmem>>, vector<1x8x32xf32>
    %123 = vector.shape_cast %122 : vector<1x8x32xf32> to vector<8x32xf32>
    %cst_73 = arith.constant dense<0.000000e+00> : vector<16x32xf32>
    %124 = tpu.matmul %121, %123, %cst_73 {dimension_numbers = #tpu.dot_dimension_numbers<[1], [0], [0], [1], [0, 0, 1, 1], [], []>} : vector<16x8xf32>, vector<8x32xf32>, vector<16x32xf32> -> vector<16x32xf32>
    %125 = arith.addf %92, %124 : vector<16x32xf32>
    %c3 = arith.constant 3 : index
    %c0_74 = arith.constant 0 : index
    %c0_75 = arith.constant 0 : index
    %126 = vector.load %arg4[%c3, %c0_74, %c0_75] : memref<4x32x8xf32, #tpu.memory_space<vmem>>, vector<1x32x8xf32>
    %127 = vector.shape_cast %126 : vector<1x32x8xf32> to vector<32x8xf32>
    %cst_76 = arith.constant dense<0.000000e+00> : vector<16x8xf32>
    %128 = tpu.matmul %22, %127, %cst_76 {dimension_numbers = #tpu.dot_dimension_numbers<[1], [0], [0], [1], [0, 0, 1, 1], [], []>} : vector<16x32xf32>, vector<32x8xf32>, vector<16x8xf32> -> vector<16x8xf32>
    %c3_77 = arith.constant 3 : index
    %c0_78 = arith.constant 0 : index
    %c0_79 = arith.constant 0 : index
    %129 = vector.load %arg5[%c3_77, %c0_78, %c0_79] : memref<4x32x8xf32, #tpu.memory_space<vmem>>, vector<1x32x8xf32>
    %130 = vector.shape_cast %129 : vector<1x32x8xf32> to vector<32x8xf32>
    %cst_80 = arith.constant dense<0.000000e+00> : vector<16x8xf32>
    %131 = tpu.matmul %22, %130, %cst_80 {dimension_numbers = #tpu.dot_dimension_numbers<[1], [0], [0], [1], [0, 0, 1, 1], [], []>} : vector<16x32xf32>, vector<32x8xf32>, vector<16x8xf32> -> vector<16x8xf32>
    %c3_81 = arith.constant 3 : index
    %c0_82 = arith.constant 0 : index
    %c0_83 = arith.constant 0 : index
    %132 = vector.load %arg6[%c3_81, %c0_82, %c0_83] : memref<4x32x8xf32, #tpu.memory_space<vmem>>, vector<1x32x8xf32>
    %133 = vector.shape_cast %132 : vector<1x32x8xf32> to vector<32x8xf32>
    %cst_84 = arith.constant dense<0.000000e+00> : vector<16x8xf32>
    %134 = tpu.matmul %22, %133, %cst_84 {dimension_numbers = #tpu.dot_dimension_numbers<[1], [0], [0], [1], [0, 0, 1, 1], [], []>} : vector<16x32xf32>, vector<32x8xf32>, vector<16x8xf32> -> vector<16x8xf32>
    %135 = vector.shape_cast %128 : vector<16x8xf32> to vector<2x8x8xf32>
    %136 = vector.shape_cast %131 : vector<16x8xf32> to vector<2x8x8xf32>
    %137 = vector.shape_cast %134 : vector<16x8xf32> to vector<2x8x8xf32>
    "tpu.trace_start"() <{level = 10 : i32, message = "bqd,bkd->bqk"}> : () -> ()
    %cst_85 = arith.constant dense<0.000000e+00> : vector<2x8x8xf32>
    %138 = tpu.matmul %135, %136, %cst_85 {dimension_numbers = #tpu.dot_dimension_numbers<[2], [2], [1], [1], [0, 0, 0, 1, 1, 1], [0], [0]>} : vector<2x8x8xf32>, vector<2x8x8xf32>, vector<2x8x8xf32> -> vector<2x8x8xf32>
    "tpu.trace_stop"() : () -> ()
    %cst_86 = arith.constant 0.176776692 : f32
    %139 = vector.broadcast %cst_86 : f32 to vector<2x8x8xf32>
    %140 = arith.mulf %138, %139 : vector<2x8x8xf32>
    %cst_87 = arith.constant 0xFF800000 : f32
    %141 = vector.broadcast %cst_87 : f32 to vector<2x8x8xf32>
    %142 = arith.select %25, %140, %141 : vector<2x8x8xi1>, vector<2x8x8xf32>
    %cst_88 = arith.constant dense<0xFF800000> : vector<2x8xf32>
    %143 = vector.multi_reduction <maximumf>, %142, %cst_88 [2] : vector<2x8x8xf32> to vector<2x8xf32>
    %144 = vector.shape_cast %143 : vector<2x8xf32> to vector<2x8x1xf32>
    %145 = vector.broadcast %144 : vector<2x8x1xf32> to vector<2x8x8xf32>
    %146 = arith.subf %142, %145 : vector<2x8x8xf32>
    %147 = math.exp %146 : vector<2x8x8xf32>
    %cst_89 = arith.constant dense<0.000000e+00> : vector<2x8xf32>
    %148 = vector.multi_reduction <add>, %147, %cst_89 [2] : vector<2x8x8xf32> to vector<2x8xf32>
    %149 = vector.shape_cast %148 : vector<2x8xf32> to vector<2x8x1xf32>
    %150 = tpu.reciprocal %149 : vector<2x8x1xf32> -> vector<2x8x1xf32>
    %151 = vector.broadcast %150 : vector<2x8x1xf32> to vector<2x8x8xf32>
    %152 = arith.mulf %147, %151 : vector<2x8x8xf32>
    "tpu.trace_start"() <{level = 10 : i32, message = "bqk,bkd->bqd"}> : () -> ()
    %cst_90 = arith.constant dense<0.000000e+00> : vector<2x8x8xf32>
    %153 = tpu.matmul %152, %137, %cst_90 {dimension_numbers = #tpu.dot_dimension_numbers<[2], [1], [1], [2], [0, 0, 0, 1, 1, 2], [0], [0]>} : vector<2x8x8xf32>, vector<2x8x8xf32>, vector<2x8x8xf32> -> vector<2x8x8xf32>
    "tpu.trace_stop"() : () -> ()
    %154 = vector.shape_cast %153 : vector<2x8x8xf32> to vector<16x8xf32>
    %c3_91 = arith.constant 3 : index
    %c0_92 = arith.constant 0 : index
    %c0_93 = arith.constant 0 : index
    %155 = vector.load %arg7[%c3_91, %c0_92, %c0_93] : memref<4x8x32xf32, #tpu.memory_space<vmem>>, vector<1x8x32xf32>
    %156 = vector.shape_cast %155 : vector<1x8x32xf32> to vector<8x32xf32>
    %cst_94 = arith.constant dense<0.000000e+00> : vector<16x32xf32>
    %157 = tpu.matmul %154, %156, %cst_94 {dimension_numbers = #tpu.dot_dimension_numbers<[1], [0], [0], [1], [0, 0, 1, 1], [], []>} : vector<16x8xf32>, vector<8x32xf32>, vector<16x32xf32> -> vector<16x32xf32>
    %158 = arith.addf %125, %157 : vector<16x32xf32>
    %c0_95 = arith.constant 0 : index
    %c0_96 = arith.constant 0 : index
    %159 = vector.load %arg8[%c0_95, %c0_96] : memref<1x32xf32, #tpu.memory_space<vmem>>, vector<1x32xf32>
    %160 = vector.broadcast %159 : vector<1x32xf32> to vector<16x32xf32>
    %161 = arith.addf %158, %160 : vector<16x32xf32>
    %162 = arith.addf %0, %161 : vector<16x32xf32>
    %c0_97 = arith.constant 0 : index
    %c0_98 = arith.constant 0 : index
    %163 = vector.load %arg9[%c0_97, %c0_98] : memref<1x32xf32, #tpu.memory_space<vmem>>, vector<1x32xf32>
    %c0_99 = arith.constant 0 : index
    %c0_100 = arith.constant 0 : index
    %164 = vector.load %arg10[%c0_99, %c0_100] : memref<1x32xf32, #tpu.memory_space<vmem>>, vector<1x32xf32>
    %cst_101 = arith.constant dense<0.000000e+00> : vector<16xf32>
    %165 = vector.multi_reduction <add>, %162, %cst_101 [1] : vector<16x32xf32> to vector<16xf32>
    %166 = vector.shape_cast %165 : vector<16xf32> to vector<16x1xf32>
    %cst_102 = arith.constant 3.200000e+01 : f32
    %167 = vector.broadcast %cst_102 : f32 to vector<16x1xf32>
    %168 = arith.divf %166, %167 : vector<16x1xf32>
    %169 = vector.broadcast %168 : vector<16x1xf32> to vector<16x32xf32>
    %170 = arith.subf %162, %169 : vector<16x32xf32>
    %171 = arith.mulf %170, %170 : vector<16x32xf32>
    %cst_103 = arith.constant dense<0.000000e+00> : vector<16xf32>
    %172 = vector.multi_reduction <add>, %171, %cst_103 [1] : vector<16x32xf32> to vector<16xf32>
    %173 = vector.shape_cast %172 : vector<16xf32> to vector<16x1xf32>
    %cst_104 = arith.constant 3.200000e+01 : f32
    %174 = vector.broadcast %cst_104 : f32 to vector<16x1xf32>
    %175 = arith.divf %173, %174 : vector<16x1xf32>
    %cst_105 = arith.constant 9.99999974E-6 : f32
    %176 = vector.broadcast %cst_105 : f32 to vector<16x1xf32>
    %177 = arith.addf %175, %176 : vector<16x1xf32>
    %178 = math.rsqrt %177 : vector<16x1xf32>
    %179 = vector.broadcast %178 : vector<16x1xf32> to vector<16x32xf32>
    %180 = arith.mulf %170, %179 : vector<16x32xf32>
    %181 = vector.broadcast %163 : vector<1x32xf32> to vector<16x32xf32>
    %182 = arith.mulf %180, %181 : vector<16x32xf32>
    %183 = vector.broadcast %164 : vector<1x32xf32> to vector<16x32xf32>
    %184 = arith.addf %182, %183 : vector<16x32xf32>
    %c0_106 = arith.constant 0 : index
    %c0_107 = arith.constant 0 : index
    %185 = vector.load %arg11[%c0_106, %c0_107] : memref<32x128xf32, #tpu.memory_space<vmem>>, vector<32x128xf32>
    %cst_108 = arith.constant dense<0.000000e+00> : vector<16x128xf32>
    %186 = tpu.matmul %184, %185, %cst_108 {dimension_numbers = #tpu.dot_dimension_numbers<[1], [0], [0], [1], [0, 0, 1, 1], [], []>} : vector<16x32xf32>, vector<32x128xf32>, vector<16x128xf32> -> vector<16x128xf32>
    %c0_109 = arith.constant 0 : index
    %c0_110 = arith.constant 0 : index
    %187 = vector.load %arg12[%c0_109, %c0_110] : memref<1x128xf32, #tpu.memory_space<vmem>>, vector<1x128xf32>
    %188 = vector.broadcast %187 : vector<1x128xf32> to vector<16x128xf32>
    %189 = arith.addf %186, %188 : vector<16x128xf32>
    %cst_111 = arith.constant 0.000000e+00 : f32
    %190 = vector.broadcast %cst_111 : f32 to vector<16x128xf32>
    %191 = arith.maximumf %189, %190 : vector<16x128xf32>
    %c0_112 = arith.constant 0 : index
    %c0_113 = arith.constant 0 : index
    %192 = vector.load %arg13[%c0_112, %c0_113] : memref<128x32xf32, #tpu.memory_space<vmem>>, vector<128x32xf32>
    %cst_114 = arith.constant dense<0.000000e+00> : vector<16x32xf32>
    %193 = tpu.matmul %191, %192, %cst_114 {dimension_numbers = #tpu.dot_dimension_numbers<[1], [0], [0], [1], [0, 0, 1, 1], [], []>} : vector<16x128xf32>, vector<128x32xf32>, vector<16x32xf32> -> vector<16x32xf32>
    %c0_115 = arith.constant 0 : index
    %c0_116 = arith.constant 0 : index
    %194 = vector.load %arg14[%c0_115, %c0_116] : memref<1x32xf32, #tpu.memory_space<vmem>>, vector<1x32xf32>
    %195 = vector.broadcast %194 : vector<1x32xf32> to vector<16x32xf32>
    %196 = arith.addf %193, %195 : vector<16x32xf32>
    %197 = arith.addf %162, %196 : vector<16x32xf32>
    %c0_117 = arith.constant 0 : index
    %c0_118 = arith.constant 0 : index
    %198 = vector.load %arg15[%c0_117, %c0_118] : memref<16x32xf32, #tpu.memory_space<vmem>>, vector<16x32xf32>
    tpu.vector_store %arg15[%c0_117, %c0_118], %197 {strides = array<i32>} : memref<16x32xf32, #tpu.memory_space<vmem>>, vector<16x32xf32>,
    return
  }
  func.func @transform_0(%arg0: i32) -> (i32, i32) {
    %c0_i32 = arith.constant 0 : i32
    %c0_i32_0 = arith.constant 0 : i32
    return %arg0, %c0_i32 : i32, i32
  }
  func.func @transform_1(%arg0: i32) -> (i32, i32) {
    %c0_i32 = arith.constant 0 : i32
    %c0_i32_0 = arith.constant 0 : i32
    %c0_i32_1 = arith.constant 0 : i32
    return %c0_i32, %c0_i32_0 : i32, i32
  }
  func.func @transform_2(%arg0: i32) -> (i32, i32) {
    %c0_i32 = arith.constant 0 : i32
    %c0_i32_0 = arith.constant 0 : i32
    %c0_i32_1 = arith.constant 0 : i32
    return %c0_i32, %c0_i32_0 : i32, i32
  }
  func.func @transform_3(%arg0: i32) -> (i32, i32, i32) {
    %c0_i32 = arith.constant 0 : i32
    %c0_i32_0 = arith.constant 0 : i32
    %c0_i32_1 = arith.constant 0 : i32
    %c0_i32_2 = arith.constant 0 : i32
    return %c0_i32, %c0_i32_0, %c0_i32_1 : i32, i32, i32
  }
  func.func @transform_4(%arg0: i32) -> (i32, i32, i32) {
    %c0_i32 = arith.constant 0 : i32
    %c0_i32_0 = arith.constant 0 : i32
    %c0_i32_1 = arith.constant 0 : i32
    %c0_i32_2 = arith.constant 0 : i32
    return %c0_i32, %c0_i32_0, %c0_i32_1 : i32, i32, i32
  }
  func.func @transform_5(%arg0: i32) -> (i32, i32, i32) {
    %c0_i32 = arith.constant 0 : i32
    %c0_i32_0 = arith.constant 0 : i32
    %c0_i32_1 = arith.constant 0 : i32
    %c0_i32_2 = arith.constant 0 : i32
    return %c0_i32, %c0_i32_0, %c0_i32_1 : i32, i32, i32
  }
  func.func @transform_6(%arg0: i32) -> (i32, i32, i32) {
    %c0_i32 = arith.constant 0 : i32
    %c0_i32_0 = arith.constant 0 : i32
    %c0_i32_1 = arith.constant 0 : i32
    %c0_i32_2 = arith.constant 0 : i32
    return %c0_i32, %c0_i32_0, %c0_i32_1 : i32, i32, i32
  }
  func.func @transform_7(%arg0: i32) -> (i32, i32) {
    %c0_i32 = arith.constant 0 : i32
    %c0_i32_0 = arith.constant 0 : i32
    %c0_i32_1 = arith.constant 0 : i32
    return %c0_i32, %c0_i32_0 : i32, i32
  }
  func.func @transform_8(%arg0: i32) -> (i32, i32) {
    %c0_i32 = arith.constant 0 : i32
    %c0_i32_0 = arith.constant 0 : i32
    %c0_i32_1 = arith.constant 0 : i32
    return %c0_i32, %c0_i32_0 : i32, i32
  }
  func.func @transform_9(%arg0: i32) -> (i32, i32) {
    %c0_i32 = arith.constant 0 : i32
    %c0_i32_0 = arith.constant 0 : i32
    %c0_i32_1 = arith.constant 0 : i32
    return %c0_i32, %c0_i32_0 : i32, i32
  }
  func.func @transform_10(%arg0: i32) -> (i32, i32) {
    %c0_i32 = arith.constant 0 : i32
    %c0_i32_0 = arith.constant 0 : i32
    %c0_i32_1 = arith.constant 0 : i32
    return %c0_i32, %c0_i32_0 : i32, i32
  }
  func.func @transform_11(%arg0: i32) -> (i32, i32) {
    %c0_i32 = arith.constant 0 : i32
    %c0_i32_0 = arith.constant 0 : i32
    %c0_i32_1 = arith.constant 0 : i32
    return %c0_i32, %c0_i32_0 : i32, i32
  }
  func.func @transform_12(%arg0: i32) -> (i32, i32) {
    %c0_i32 = arith.constant 0 : i32
    %c0_i32_0 = arith.constant 0 : i32
    %c0_i32_1 = arith.constant 0 : i32
    return %c0_i32, %c0_i32_0 : i32, i32
  }
  func.func @transform_13(%arg0: i32) -> (i32, i32) {
    %c0_i32 = arith.constant 0 : i32
    %c0_i32_0 = arith.constant 0 : i32
    %c0_i32_1 = arith.constant 0 : i32
    return %c0_i32, %c0_i32_0 : i32, i32
  }
  func.func @transform_14(%arg0: i32) -> (i32, i32) {
    %c0_i32 = arith.constant 0 : i32
    %c0_i32_0 = arith.constant 0 : i32
    return %arg0, %c0_i32 : i32, i32
  }
}

</mosaic_0001>

<bundles_post_ra>
// kernel: tpu_custom_call.1
= control target key start
LH: loop header
LB: loop body
LE: loop exit
PB: predicated region body
PF: predicated region fallthrough
CT: control target
= control target key end

     0   :  { %s2689_s0 = inlined_call_operand.vmem [shape: f32[32,32], index: 0, kind: input, shape index: {}]   ;;  %s2690_s1 = inlined_call_operand.vmem [shape: f32[1,32], index: 1, kind: input, shape index: {}]   ;;  %s2691_s2 = inlined_call_operand.vmem [shape: f32[1,32], index: 2, kind: input, shape index: {}]   ;;  %s2692_s3 = inlined_call_operand.vmem [shape: f32[4,32,8], index: 3, kind: input, shape index: {}]   ;;  %s2693_s4 = inlined_call_operand.vmem [shape: f32[4,32,8], index: 4, kind: input, shape index: {}]   ;;  %s2694_s5 = inlined_call_operand.vmem [shape: f32[4,32,8], index: 5, kind: input, shape index: {}]   ;;  %s2695_s6 = inlined_call_operand.vmem [shape: f32[4,8,32], index: 6, kind: input, shape index: {}]   ;;  %s2696_s7 = inlined_call_operand.vmem [shape: f32[1,32], index: 7, kind: input, shape index: {}]   ;;  %s2697_s8 = inlined_call_operand.vmem [shape: f32[1,32], index: 8, kind: input, shape index: {}]   ;;  %s2698_s9 = inlined_call_operand.vmem [shape: f32[1,32], index: 9, kind: input, shape index: {}]   ;;  %s2699_s10 = inlined_call_operand.vmem [shape: f32[32,128], index: 10, kind: input, shape index: {}]   ;;  %s2700_s11 = inlined_call_operand.vmem [shape: f32[1,128], index: 11, kind: input, shape index: {}]   ;;  %s2701_s12 = inlined_call_operand.vmem [shape: f32[128,32], index: 12, kind: input, shape index: {}]   ;;  %s2702_s13 = inlined_call_operand.vmem [shape: f32[1,32], index: 13, kind: input, shape index: {}]   ;;  %s2703_s14 = inlined_call_operand.hbm [shape: f32[32,32], index: 14, kind: output, shape index: {}]  }
   0x1   :  { %2707 = sst [smem:[#allocation8_spill]] %s2689_s0 }
   0x2   :  { %19 = vsyncpa [#allocation3], 0 }
   0x3   :  { %21 = vsyncpa [#allocation3 + $0x1], 0  ;;  %s2180_s29 = smov 0   ;;  %s2182_s30 = smov 0  }
   0x4   :  { %s2184_s15 = smov 0   ;;  %s2186_s16 = smov 0  }
   0x5 LB: > { %2708 = sst [smem:[#allocation5_spill]] %s2096_s15  ;;  %s2201_s17 = sadd.s32 4294967295, %s2100_s16   ;;  %s2100_s16 = sphi %s2186_s16, %s2716_s16   ;;  %s2096_s15 = sphi %s2184_s15, %s2718_s15   ;;  %s2092_s30 = sphi %s2182_s30, %s2720_s30   ;;  %s2088_s29 = sphi %s2180_s29, %s2719_s29  }
   0x6   : > { %s1835_s18 = sadd.s32 4294967294, %s2100_s16   ;;  %s2205_s19 = sadd.s32 1, %s2100_s16  }
   0x7   : > { %2709 = sst [smem:[#allocation6_spill]] %s2205_s19  ;;  %s333_s20 = sadd.s32 1, %s2096_s15 }
   0x8   : > { %s330_s21 = ssub.s32 %s2100_s16, %s2205_s19  ;;  %p343_p0 = scmp.ne.s32.totalorder %s2096_s15, %s2092_s30 }
   0x9   : > { %p331_p1 = scmp.eq.s32.totalorder %s330_s21, 0  ;;  %p344_p2 = scmp.eq.s32.totalorder %s2201_s17, 1 }
   0xa   : > { %p349_p3 = scmp.ne.s32.totalorder %s2092_s30, %s2088_s29  ;;  %p350_p4 = scmp.eq.s32.totalorder %s1835_s18, 1 }
   0xb   : > { %s2216_s22 = scalar_select %p331_p1, %s2096_s15, %s333_s20  }
   0xc   : > { %p2218_p5 = por %p344_p2, %p343_p0  ;;  %p2222_p6 = por %p350_p4, %p349_p3 }
   0xd   : > { %2710 = sst [smem:[#allocation7_spill]] %s2216_s22  ;;  %p1838_p7 = scmp.ge.s32.totalorder %s2100_s16, 1 }
   0xe   : > { %p416_p8 = scmp.lt.s32.totalorder %s2100_s16, 3 }
  0x10   : > { %p417_p9 = pnand %p1838_p7, %p416_p8 }
  0x11   : > { %s1840_s25 = sshll.u32 (!%p417_p9), %s2201_s17, 1  ;;  %s2713_s0 = sld [smem:[#allocation8_spill]] (!%p417_p9) }
  0x12   : > { %420 = sbr.rel (%p417_p9) target bundleno = 3149 (0xc4d), region = 76  ;;  %p463_p10 = scmp.lt.s32.totalorder (!%p417_p9), %s1840_s25, 3 }
  0x13   : > { %s459_s21 = sand.u32 (!%p417_p9), 1, %s2092_s30   ;;  %s1944_s28 = sshll.u32 (!%p417_p9), %s2201_s17, 4 }
  0x14   : > { %s1839_s27 = sshll.u32 (!%p417_p9), %s459_s21, 4  ;;  %s1769_s15 = scalar_lea.hbm (!%p417_p9), %s2703_s14, %s1944_s28 }
  0x15   : > { %s461_s19 = scalar_lea.vmem (!%p417_p9), [#allocation2], %s1839_s27  ;;  %s1772_s20 = sshll.u32 (!%p417_p9), %s1769_s15, 4  ;;  %s1773_s20 = int_to_ptr.hbm [resolvable:$true] %s1772_s20 }
  0x16   : > { %s1758_s17 = scalar_lea.sflag (!%p417_p9), [#allocation3], %s459_s21 }
  0x17   : > { %s2722_s25 = smov (!%p463_p10, %s1840_s25), 3  ;;  %vm473_vm0 = vcmask 261120   ;;  %v2102_v4 = vmov 32.0   ;;  %v543_v21 = vld [vmem:[%s2692_s3 + $0x18] sm:$0xff]  ;;  %v542_v24 = vld [vmem:[%s2692_s3 + $0x10] sm:$0xff]  ;;  %v541_v27 = vld [vmem:[%s2692_s3 + $0x8] sm:$0xff] }
  0x18   : > { %s1841_s26 = sshll.u32 %s2722_s25, 3  ;;  %1994 = vrcp.f32 %v2102_v4  ;;  %v576_v22 = vld [vmem:[%s2693_s4 + $0x18] sm:$0xff]  ;;  %562 = vmatpush.msra.mxu0 %v543_v21  ;;  %v575_v25 = vld [vmem:[%s2693_s4 + $0x10] sm:$0xff]  ;;  %v574_v28 = vld [vmem:[%s2693_s4 + $0x8] sm:$0xff]  ;;  %vm627_vm8 = vcmask 64512   ;;  %s2052_s25 = sshra.s32 %s1773_s20, 4  ;;  %s2053_s25 = int_to_ptr.hbm [resolvable:$true] %s2052_s25 }
  0x19   : > { %s2232_s18 = scalar_lea.vmem %s2713_s0, %s1841_s26  ;;  %v603_v23 = vld [vmem:[%s2694_s5 + $0x18] sm:$0xff]  ;;  %589 = vmatpush.msra.mxu1 %v576_v22  ;;  %v602_v26 = vld [vmem:[%s2694_s5 + $0x10] sm:$0xff]  ;;  %v601_v29 = vld [vmem:[%s2694_s5 + $0x8] sm:$0xff]  ;;  %s2054_s26 = scalar_lea.hbm %s2053_s25, 16 }
  0x1a   : > { %v469_v0 = vld [vmem:[%s2232_s18] sm:$0xff]  ;;  %v470_v2 = vld [vmem:[%s2232_s18 + $0x8] sm:$0xff]  ;;  %616 = vmatpush.msra.mxu2 %v603_v23  ;;  %563 = vmatpush.msra.mxu0 %v542_v24  ;;  %v1863_v36 = vld [vmem:[%s2693_s4 + $0x38] sm:$0xff]  ;;  %p2055_p11 = scmp.ne.s32.totalorder %s2053_s25, %s2054_s26  ;;  %s2058_s0 = scalar_lea.hbm %s2703_s14, 32 }
  0x1b   : > { %v474_v1 = vsel %vm473_vm0, %v469_v0, 0.0  ;;  %v477_v3 = vsel %vm473_vm0, %v470_v2, 0.0  ;;  %590 = vmatpush.msra.mxu1 %v575_v25  ;;  %v540_v30 = vld [vmem:[%s2692_s3] sm:$0xff]  ;;  %v1862_v37 = vld [vmem:[%s2693_s4 + $0x30] sm:$0xff]  ;;  %v1861_v39 = vld [vmem:[%s2693_s4 + $0x28] sm:$0xff]  ;;  %p2059_p0 = scmp.lt.s32.totalorder %s2053_s25, %s2703_s14  ;;  %p2060_p1 = scmp.lt.s32.totalorder %s2058_s0, %s2054_s26 }
  0x1c   : > { %475 = vadd.xlane.f32.xlu0 %v474_v1  ;;  %617 = vmatpush.msra.mxu2 %v602_v26  ;;  %v573_v31 = vld [vmem:[%s2693_s4] sm:$0xff]  ;;  %v1857_v1 = vld [vmem:[%s2692_s3 + $0x38] sm:$0xff]  ;;  %v1856_v4 = vld [vmem:[%s2692_s3 + $0x30] sm:$0xff]  ;;  %p2056_p12 = pnand %p2055_p11, %p2218_p5 }
  0x1d   : > { %564 = vmatpush.msra.mxu0 %v541_v27  ;;  %591 = vmatpush.msra.mxu1 %v574_v28  ;;  %v600_v32 = vld [vmem:[%s2694_s5] sm:$0xff]  ;;  %p2061_p2 = por %p2060_p1, %p2059_p0 }
  0x1e   : > { %v1995_v5 = vpop.eup %1994  ;;  %618 = vmatpush.msra.mxu2 %v601_v29  ;;  %v1860_v41 = vld [vmem:[%s2693_s4 + $0x20] sm:$0xff]  ;;  %p2057_p13 = pneg %p2056_p12 }
  0x1f   : > { %v481_v6 = vmul.f32 32.0, %v1995_v5  ;;  %vm485_vm1 = vweird.f32 %v1995_v5  ;;  %565 = vmatpush.msra.mxu0 %v540_v30  ;;  %592 = vmatpush.msra.mxu1 %v573_v31  ;;  %v1987_v51 = vld [vmem:[%s2690_s1] ss:$0 sm:$0xff] }
  0x20   : > { %619 = vmatpush.msra.mxu2 %v600_v32  ;;  %v1988_v54 = vld [vmem:[%s2691_s2] ss:$0 sm:$0xff]  ;;  %p2062_p3 = pnand %p2061_p2, %p2057_p13 }
  0x21   : > { %v482_v7 = vsub.f32 1.0, %v481_v6  ;;  %v1854_v6 = vld [vmem:[%s2692_s3 + $0x20] sm:$0xff] }
  0x22   : > { %824 = vmatpush.msrb.mxu2 %v1863_v36  ;;  %v1867_v36 = vld [vmem:[%s2694_s5 + $0x28] sm:$0xff] }
  0x23   : > { %v483_v8 = vmul.f32 %v1995_v5, %v482_v7 }
  0x24   : > { %478 = vadd.xlane.f32.xlu0 %v477_v3  ;;  %825 = vmatpush.msrb.mxu2 %v1862_v37  ;;  %v1866_v37 = vld [vmem:[%s2694_s5 + $0x20] sm:$0xff] }
  0x25   : > { %v484_v9 = vadd.f32 %v1995_v5, %v483_v8 }
  0x26   : > { %826 = vmatpush.msrb.mxu2 %v1861_v39 }
  0x27   : > { %v2238_v10 = vsel %vm485_vm1, %v1995_v5, %v484_v9  ;;  %v1855_v5 = vld [vmem:[%s2692_s3 + $0x28] sm:$0xff] }
  0x28   : > { %827 = vmatpush.msrb.mxu2 %v1860_v41 }
  0x8f   : > { %v476_v11 = vpop.xlane.xlu0 %475 }
  0x90   : > { %v487_v12 = vmul.f32 %v2238_v10, %v476_v11 }
  0x92   : > { %v2241_v13 = vsub.f32 %v469_v0, %v487_v12  ;;  %v535_v12 = vlaneseq }
  0x94   : > { %v491_v14 = vmul.f32 %v2241_v13, %v2241_v13 }
  0x96   : > { %v493_v15 = vsel %vm473_vm0, %v491_v14, 0.0  ;;  %v538_v14 = vand.u32 127, %v535_v12 }
  0x97   : > { %494 = vadd.xlane.f32.xlu1 %v493_v15  ;;  %v479_v16 = vpop.xlane.xlu0 %478 }
  0x98   : > { %v488_v17 = vmul.f32 %v2238_v10, %v479_v16 }
  0x9a   : > { %v2247_v18 = vsub.f32 %v470_v2, %v488_v17 }
  0x9c   : > { %v492_v19 = vmul.f32 %v2247_v18, %v2247_v18 }
  0x9e   : > { %v496_v20 = vsel %vm473_vm0, %v492_v19, 0.0 }
  0x9f   : > { %497 = vadd.xlane.f32.xlu1 %v496_v20 }
 0x10a   : > { %v495_v33 = vpop.xlane.xlu1 %494 }
 0x10b   : > { %v499_v34 = vmul.f32 %v495_v33, %v2238_v10 }
 0x10d   : > { %v501_v35 = vadd.f32 1e-05, %v499_v34  ;;  %v1869_v34 = vld [vmem:[%s2694_s5 + $0x38] sm:$0xff] }
 0x10f   : > { %1996 = vrsqrt.f32 %v501_v35  ;;  %vm509_vm3 = vweird.f32 %v501_v35 }
 0x112   : > { %v498_v38 = vpop.xlane.xlu1 %497 }
 0x113   : > { %v500_v40 = vmul.f32 %v498_v38, %v2238_v10 }
 0x115   : > { %v1997_v42 = vpop.eup %1996  ;;  %v502_v43 = vadd.f32 1e-05, %v500_v40 }
 0x116   : > { %v504_v44 = vmul.f32 %v1997_v42, %v501_v35  ;;  %vm510_vm2 = vweird.f32 %v1997_v42  ;;  %v1868_v35 = vld [vmem:[%s2694_s5 + $0x30] sm:$0xff] }
 0x117   : > { %1998 = vrsqrt.f32 %v502_v43  ;;  %vm511_vm4 = vmor %vm509_vm3, %vm510_vm2  ;;  %vm519_vm6 = vweird.f32 %v502_v43 }
 0x118   : > { %v505_v45 = vmul.f32 %v1997_v42, %v504_v44 }
 0x11a   : > { %v506_v46 = vmul.f32 0.5, %v505_v45 }
 0x11c   : > { %v507_v47 = vsub.f32 1.5, %v506_v46 }
 0x11d   : > { %v1999_v48 = vpop.eup %1998 }
 0x11e   : > { %v508_v49 = vmul.f32 %v1997_v42, %v507_v47  ;;  %v514_v50 = vmul.f32 %v1999_v48, %v502_v43  ;;  %vm520_vm5 = vweird.f32 %v1999_v48 }
 0x11f   : > { %vm521_vm7 = vmor %vm519_vm6, %vm520_vm5 }
 0x120   : > { %v512_v52 = vsel %vm511_vm4, %v1997_v42, %v508_v49  ;;  %v515_v53 = vmul.f32 %v1999_v48, %v514_v50 }
 0x121   : > { %v523_v55 = vmul.f32 %v512_v52, %v2241_v13  ;;  %v536_v13 = vshrl.u32 %v535_v12, 7 }
 0x122   : > { %v516_v56 = vmul.f32 0.5, %v515_v53 }
 0x123   : > { %v528_v57 = vmul.f32 %v1987_v51, %v523_v55  ;;  %vm2350_vm9 = vcmp.ge.s32.totalorder %v536_v13, %v538_v14 }
 0x124   : > { %v517_v58 = vsub.f32 1.5, %v516_v56 }
 0x125   : > { %v2309_v59 = vadd.f32 %v1988_v54, %v528_v57 }
 0x126   : > { %v518_v60 = vmul.f32 %v1999_v48, %v517_v58 }
 0x127   : > { %1842 = vmatmul.msk.f32.vlgmr.msra.gmra.mxu0 %vm473_vm0, %v2309_v59  ;;  %1844 = vmatmul.msk.f32.vlgmr.msra.gmra.mxu1 %vm473_vm0, %v2309_v59 }
 0x128   : > { %v522_v61 = vsel %vm521_vm7, %v1999_v48, %v518_v60  ;;  %1846 = vmatmul.msk.f32.vlgmr.msra.gmra.mxu2 %vm473_vm0, %v2309_v59 }
 0x129   : > { %v524_v62 = vmul.f32 %v522_v61, %v2247_v18 }
 0x12b   : > { %v529_v63 = vmul.f32 %v1987_v51, %v524_v62 }
 0x12d   : > { %v2318_v0 = vadd.f32 %v1988_v54, %v529_v63 }
 0x12f   : > { %1843 = vmatmul.msk.f32.gmra.mxu0 %vm473_vm0, %v2318_v0  ;;  %1845 = vmatmul.msk.f32.gmra.mxu1 %vm473_vm0, %v2318_v0 }
 0x130   : > { %1847 = vmatmul.msk.f32.gmra.mxu2 %vm473_vm0, %v2318_v0 }
 0x138   : > { %1864 = vmatmul.msk.f32.vlgmr.msrb.gmra.mxu2 %vm473_vm0, %v2309_v59 }
 0x140   : > { %1865 = vmatmul.msk.f32.gmra.mxu2 %vm473_vm0, %v2318_v0 }
 0x1a4   : > { %v594_v2 = vpop.f32.mrf.mxu1  ;;  %v567_v3 = vpop.f32.mrf.mxu0 }
 0x1a5   : > { %1848 = vmatpush.xpose.msk.msrb.mxu1 %vm627_vm8, %v594_v2 }
 0x1a8   : > { %1849 = vmatmul.msk.f32.vlgmr.msrb.gmra.mxu1 %vm627_vm8, %v567_v3 }
 0x1a9   : > { %796 = vmatpush.msra.mxu1 %v1857_v1 }
 0x1ab   : > { %797 = vmatpush.msra.mxu1 %v1856_v4  ;;  %v621_v7 = vpop.f32.mrf.mxu2  ;;  %v778_v4 = vld [vmem:[%s2695_s6] sm:$0xff] }
 0x1ac   : > { %v597_v8 = vpop.f32.mrf.mxu1  ;;  %v570_v9 = vpop.f32.mrf.mxu0 }
 0x1ad   : > { %798 = vmatpush.msra.mxu1 %v1855_v5  ;;  %1850 = vmatpush.xpose.msk.msra.mxu3 %vm627_vm8, %v597_v8 }
 0x1af   : > { %799 = vmatpush.msra.mxu1 %v1854_v6 }
 0x1b0   : > { %1851 = vmatmul.msk.f32.vlgmr.msra.gmra.mxu3 %vm627_vm8, %v570_v9  ;;  %1858 = vmatmul.msk.f32.vlgmr.msra.gmra.mxu1 %vm473_vm0, %v2309_v59 }
 0x1b1   : > { %750 = vmatpush.msrb.mxu3 %v621_v7 }
 0x1b3   : > { %v624_v11 = vpop.f32.mrf.mxu2 }
 0x1b4   : > { %773 = vmatpush.msrb.mxu0 %v624_v11 }
 0x1b6   : > { %852 = vmatpush.msra.mxu0 %v1869_v34  ;;  %v1891_v34 = vld [vmem:[%s2693_s4 + $0x50] sm:$0xff] }
 0x1b8   : > { %1859 = vmatmul.msk.f32.gmra.mxu1 %vm473_vm0, %v2318_v0  ;;  %853 = vmatpush.msra.mxu0 %v1868_v35  ;;  %v1890_v35 = vld [vmem:[%s2693_s4 + $0x48] sm:$0xff] }
 0x1ba   : > { %854 = vmatpush.msra.mxu0 %v1867_v36 }
 0x1bb   : > { %v829_v62 = vpop.f32.mrf.mxu2 }
 0x1bc   : > { %855 = vmatpush.msra.mxu0 %v1866_v37  ;;  %v1889_v37 = vld [vmem:[%s2693_s4 + $0x40] sm:$0xff] }
 0x1c3   : > { %v832_v1 = vpop.f32.mrf.mxu2 }
 0x225   : > { %v651_v15 = vpop.f32.mrf.mxu1 }
 0x226   : > { %v680_v17 = vmul.f32 0.17677669, %v651_v15 }
 0x228   : > { %v682_v18 = vsel %vm2350_vm9, %v680_v17, -inf }
 0x229   : > { %v684_v19 = vsel %vm627_vm8, %v682_v18, -inf }
 0x22a   : > { %685 = vmax.xlane.f32.xlu0 %v684_v19 }
 0x22d   : > { %v801_v2 = vpop.f32.mrf.mxu1 }
 0x233   : > { %v677_v20 = vpop.f32.mrf.mxu3 }
 0x234   : > { %v681_v21 = vmul.f32 0.17677669, %v677_v20 }
 0x235   : > { %v804_v3 = vpop.f32.mrf.mxu1 }
 0x236   : > { %v683_v22 = vsel %vm2350_vm9, %v681_v21, -inf }
 0x237   : > { %v687_v23 = vsel %vm627_vm8, %v683_v22, -inf }
 0x238   : > { %688 = vmax.xlane.f32.xlu2 %v687_v23 }
 0x29d   : > { %v686_v24 = vpop.xlane.xlu0 %685 }
 0x29e   : > { %v690_v25 = vsub.f32 %v682_v18, %v686_v24 }
 0x2a0   : > { %v692_v26 = vmul.f32 1.442695, %v690_v25 }
 0x2a2   : > { %2000 = vpow2.f32 %v692_v26 }
 0x2a8   : > { %v2001_v27 = vpop.eup %2000 }
 0x2a9   : > { %v696_v28 = vsel %vm627_vm8, %v2001_v27, 0.0 }
 0x2aa   : > { %697 = vadd.xlane.f32.xlu0 %v696_v28 }
 0x2ab   : > { %v689_v29 = vpop.xlane.xlu2 %688 }
 0x2ac   : > { %v691_v30 = vsub.f32 %v683_v22, %v689_v29  ;;  %v1886_v29 = vld [vmem:[%s2692_s3 + $0x58] sm:$0xff] }
 0x2ae   : > { %v694_v31 = vmul.f32 1.442695, %v691_v30  ;;  %v1885_v30 = vld [vmem:[%s2692_s3 + $0x50] sm:$0xff] }
 0x2b0   : > { %2002 = vpow2.f32 %v694_v31  ;;  %v1884_v31 = vld [vmem:[%s2692_s3 + $0x48] sm:$0xff] }
 0x2b6   : > { %v2003_v32 = vpop.eup %2002 }
 0x2b7   : > { %v699_v33 = vsel %vm627_vm8, %v2003_v32, 0.0 }
 0x2b8   : > { %700 = vadd.xlane.f32.xlu2 %v699_v33  ;;  %v1892_v33 = vld [vmem:[%s2693_s4 + $0x58] sm:$0xff] }
 0x31d   : > { %v698_v38 = vpop.xlane.xlu0 %697 }
 0x31e   : > { %2004 = vrcp.f32 %v698_v38  ;;  %v713_v42 = vand.u32 2147483648, %v698_v38  ;;  %v711_v44 = vand.u32 2147483647, %v698_v38  ;;  %vm707_vm11 = vweird.f32 %v698_v38 }
 0x320   : > { %v714_v47 = vor.u32 1.1754944e-38, %v713_v42  ;;  %vm712_vm13 = vcmp.eq.f32.partialorder %v711_v44, 8.507059e+37 }
 0x324   : > { %v2005_v39 = vpop.eup %2004 }
 0x325   : > { %v703_v40 = vmul.f32 %v2005_v39, %v698_v38  ;;  %vm708_vm10 = vweird.f32 %v2005_v39 }
 0x326   : > { %vm709_vm12 = vmor %vm707_vm11, %vm708_vm10 }
 0x327   : > { %v704_v41 = vsub.f32 1.0, %v703_v40 }
 0x329   : > { %v705_v43 = vmul.f32 %v2005_v39, %v704_v41 }
 0x32b   : > { %v706_v45 = vadd.f32 %v2005_v39, %v705_v43  ;;  %v701_v46 = vpop.xlane.xlu2 %700 }
 0x32c   : > { %2006 = vrcp.f32 %v701_v46  ;;  %v727_v54 = vand.u32 2147483648, %v701_v46  ;;  %v725_v56 = vand.u32 2147483647, %v701_v46  ;;  %vm721_vm15 = vweird.f32 %v701_v46 }
 0x32d   : > { %v710_v48 = vsel %vm709_vm12, %v2005_v39, %v706_v45 }
 0x32e   : > { %v715_v49 = vsel %vm712_vm13, %v714_v47, %v710_v48  ;;  %v728_v58 = vor.u32 1.1754944e-38, %v727_v54  ;;  %vm726_vm2 = vcmp.eq.f32.partialorder %v725_v56, 8.507059e+37 }
 0x32f   : > { %v730_v50 = vmul.f32 %v2001_v27, %v715_v49 }
 0x331   : > { %1852 = vmatmul.msk.f32.vlgmr.msrb.gmra.mxu3 %vm627_vm8, %v730_v50 }
 0x332   : > { %v2007_v51 = vpop.eup %2006 }
 0x333   : > { %v717_v52 = vmul.f32 %v2007_v51, %v701_v46  ;;  %vm722_vm14 = vweird.f32 %v2007_v51 }
 0x334   : > { %vm723_vm1 = vmor %vm721_vm15, %vm722_vm14 }
 0x335   : > { %v718_v53 = vsub.f32 1.0, %v717_v52 }
 0x337   : > { %v719_v55 = vmul.f32 %v2007_v51, %v718_v53 }
 0x339   : > { %v720_v57 = vadd.f32 %v2007_v51, %v719_v55 }
 0x33b   : > { %v724_v60 = vsel %vm723_vm1, %v2007_v51, %v720_v57 }
 0x33c   : > { %v729_v61 = vsel %vm726_vm2, %v728_v58, %v724_v60 }
 0x33d   : > { %v731_v63 = vmul.f32 %v2003_v32, %v729_v61  ;;  %v1883_v32 = vld [vmem:[%s2692_s3 + $0x40] sm:$0xff] }
 0x33f   : > { %1853 = vmatmul.msk.f32.vlgmr.msrb.gmra.mxu0 %vm627_vm8, %v731_v63  ;;  %v1898_v63 = vld [vmem:[%s2694_s5 + $0x58] sm:$0xff] }
 0x340   : > { %1872 = vmatpush.xpose.msk.msrb.mxu0 %vm627_vm8, %v829_v62  ;;  %v1878_v62 = vld [vmem:[%s2695_s6 + $0x8] sm:$0xff] }
 0x341   : > { %1036 = vmatpush.msra.mxu3 %v1878_v62 }
 0x343   : > { %1146 = vmatpush.msrb.mxu3 %v1898_v63 }
 0x347   : > { %1870 = vmatmul.msk.f32.vlgmr.msra.gmra.mxu0 %vm473_vm0, %v2309_v59 }
 0x348   : > { %1874 = vmatpush.xpose.msk.msra.mxu0 %vm627_vm8, %v832_v1  ;;  %v1897_v1 = vld [vmem:[%s2694_s5 + $0x50] sm:$0xff] }
 0x349   : > { %1147 = vmatpush.msrb.mxu3 %v1897_v1 }
 0x34f   : > { %1871 = vmatmul.msk.f32.gmra.mxu0 %vm473_vm0, %v2318_v0 }
 0x357   : > { %1873 = vmatmul.msk.f32.vlgmr.msrb.gmra.mxu0 %vm627_vm8, %v801_v2  ;;  %v1896_v2 = vld [vmem:[%s2694_s5 + $0x48] sm:$0xff] }
 0x358   : > { %1065 = vmatpush.msrb.mxu0 %v778_v4  ;;  %1148 = vmatpush.msrb.mxu3 %v1896_v2  ;;  %v1919_v4 = vld [vmem:[%s2693_s4 + $0x78] sm:$0xff] }
 0x35f   : > { %1875 = vmatmul.msk.f32.vlgmr.msra.gmra.mxu0 %vm627_vm8, %v804_v3  ;;  %v1895_v3 = vld [vmem:[%s2694_s5 + $0x40] sm:$0xff] }
 0x360   : > { %1149 = vmatpush.msrb.mxu3 %v1895_v3 }
 0x3b4   : > { %v752_v5 = vpop.f32.mrf.mxu3 }
 0x3b5   : > { %1881 = vmatmul.msk.f32.vlgmr.msrb.gmra.mxu0 %vm627_vm8, %v752_v5 }
 0x3bc   : > { %v775_v6 = vpop.f32.mrf.mxu0 }
 0x3bd   : > { %1882 = vmatmul.msk.f32.gmra.mxu0 %vm627_vm8, %v775_v6  ;;  %v1918_v6 = vld [vmem:[%s2693_s4 + $0x70] sm:$0xff] }
 0x3c4   : > { %v857_v7 = vpop.f32.mrf.mxu0 }
 0x3c5   : > { %985 = vmatpush.msrb.mxu1 %v857_v7  ;;  %v1917_v7 = vld [vmem:[%s2693_s4 + $0x68] sm:$0xff] }
 0x3c7   : > { %1090 = vmatpush.msra.mxu1 %v1886_v29 }
 0x3c9   : > { %1091 = vmatpush.msra.mxu1 %v1885_v30 }
 0x3cb   : > { %1092 = vmatpush.msra.mxu1 %v1884_v31 }
 0x3cc   : > { %v860_v8 = vpop.f32.mrf.mxu0 }
 0x3cd   : > { %1008 = vmatpush.msra.mxu2 %v860_v8  ;;  %1093 = vmatpush.msra.mxu1 %v1883_v32  ;;  %v1916_v8 = vld [vmem:[%s2693_s4 + $0x60] sm:$0xff] }
 0x3cf   : > { %1118 = vmatpush.msrb.mxu2 %v1892_v33 }
 0x3d1   : > { %1119 = vmatpush.msrb.mxu2 %v1891_v34 }
 0x3d3   : > { %1120 = vmatpush.msrb.mxu2 %v1890_v35 }
 0x3d4   : > { %v886_v9 = vpop.f32.mrf.mxu0 }
 0x3d5   : > { %v915_v11 = vmul.f32 0.17677669, %v886_v9  ;;  %1121 = vmatpush.msrb.mxu2 %v1889_v37 }
 0x3d7   : > { %v917_v12 = vsel %vm2350_vm9, %v915_v11, -inf }
 0x3d8   : > { %v919_v13 = vsel %vm627_vm8, %v917_v12, -inf }
 0x3d9   : > { %920 = vmax.xlane.f32.xlu2 %v919_v13 }
 0x3dc   : > { %v912_v14 = vpop.f32.mrf.mxu0 }
 0x3dd   : > { %v916_v15 = vmul.f32 0.17677669, %v912_v14 }
 0x3df   : > { %v918_v17 = vsel %vm2350_vm9, %v916_v15, -inf  ;;  %v1907_v15 = vld [vmem:[%s2695_s6 + $0x10] sm:$0xff] }
 0x3e0   : > { %v922_v18 = vsel %vm627_vm8, %v918_v17, -inf }
 0x3e1   : > { %923 = vmax.xlane.f32.xlu1 %v922_v18 }
 0x44c   : > { %v921_v19 = vpop.xlane.xlu2 %920 }
 0x44d   : > { %v925_v20 = vsub.f32 %v917_v12, %v921_v19 }
 0x44f   : > { %v927_v21 = vmul.f32 1.442695, %v925_v20 }
 0x451   : > { %2008 = vpow2.f32 %v927_v21 }
 0x454   : > { %v924_v22 = vpop.xlane.xlu1 %923 }
 0x455   : > { %v926_v23 = vsub.f32 %v918_v17, %v924_v22  ;;  %v2475_v17 = vpop.f32.mrf.mxu0 }
 0x457   : > { %v2009_v24 = vpop.eup %2008  ;;  %v929_v25 = vmul.f32 1.442695, %v926_v23 }
 0x458   : > { %v931_v26 = vsel %vm627_vm8, %v2009_v24, 0.0 }
 0x459   : > { %2010 = vpow2.f32 %v929_v25  ;;  %932 = vadd.xlane.f32.xlu2 %v931_v26 }
 0x45d   : > { %v1070_v19 = vpop.f32.mrf.mxu0 }
 0x45f   : > { %v2011_v27 = vpop.eup %2010 }
 0x460   : > { %v934_v28 = vsel %vm627_vm8, %v2011_v27, 0.0 }
 0x461   : > { %935 = vadd.xlane.f32.xlu1 %v934_v28 }
 0x4cc   : > { %v933_v36 = vpop.xlane.xlu2 %932 }
 0x4cd   : > { %2012 = vrcp.f32 %v933_v36  ;;  %v948_v42 = vand.u32 2147483648, %v933_v36  ;;  %v946_v44 = vand.u32 2147483647, %v933_v36  ;;  %vm942_vm4 = vweird.f32 %v933_v36 }
 0x4cf   : > { %v949_v47 = vor.u32 1.1754944e-38, %v948_v42  ;;  %vm947_vm6 = vcmp.eq.f32.partialorder %v946_v44, 8.507059e+37  ;;  %v1912_v44 = vld [vmem:[%s2692_s3 + $0x70] sm:$0xff] }
 0x4d3   : > { %v2013_v38 = vpop.eup %2012 }
 0x4d4   : > { %v938_v39 = vmul.f32 %v2013_v38, %v933_v36  ;;  %v936_v40 = vpop.xlane.xlu1 %935  ;;  %vm943_vm3 = vweird.f32 %v2013_v38 }
 0x4d5   : > { %2014 = vrcp.f32 %v936_v40  ;;  %vm944_vm5 = vmor %vm942_vm4, %vm943_vm3  ;;  %v962_v53 = vand.u32 2147483648, %v936_v40  ;;  %v960_v55 = vand.u32 2147483647, %v936_v40  ;;  %vm956_vm10 = vweird.f32 %v936_v40 }
 0x4d6   : > { %v939_v41 = vsub.f32 1.0, %v938_v39 }
 0x4d7   : > { %v963_v57 = vor.u32 1.1754944e-38, %v962_v53  ;;  %vm961_vm12 = vcmp.eq.f32.partialorder %v960_v55, 8.507059e+37 }
 0x4d8   : > { %v940_v43 = vmul.f32 %v2013_v38, %v939_v41 }
 0x4da   : > { %v941_v45 = vadd.f32 %v2013_v38, %v940_v43  ;;  %v1913_v43 = vld [vmem:[%s2692_s3 + $0x78] sm:$0xff] }
 0x4db   : > { %v2015_v46 = vpop.eup %2014 }
 0x4dc   : > { %v945_v48 = vsel %vm944_vm5, %v2013_v38, %v941_v45  ;;  %v952_v49 = vmul.f32 %v2015_v46, %v936_v40  ;;  %vm957_vm7 = vweird.f32 %v2015_v46  ;;  %v1911_v45 = vld [vmem:[%s2692_s3 + $0x68] sm:$0xff] }
 0x4dd   : > { %v950_v50 = vsel %vm947_vm6, %v949_v47, %v945_v48  ;;  %vm958_vm11 = vmor %vm956_vm10, %vm957_vm7  ;;  %v1925_v47 = vld [vmem:[%s2694_s5 + $0x78] sm:$0xff]  ;;  %v1924_v48 = vld [vmem:[%s2694_s5 + $0x70] sm:$0xff] }
 0x4de   : > { %v953_v51 = vsub.f32 1.0, %v952_v49  ;;  %v965_v52 = vmul.f32 %v2009_v24, %v950_v50  ;;  %v1923_v49 = vld [vmem:[%s2694_s5 + $0x68] sm:$0xff] }
 0x4e0   : > { %v954_v54 = vmul.f32 %v2015_v46, %v953_v51  ;;  %1876 = vmatmul.msk.f32.vlgmr.msrb.gmra.mxu1 %vm627_vm8, %v965_v52  ;;  %v1922_v51 = vld [vmem:[%s2694_s5 + $0x60] sm:$0xff] }
 0x4e2   : > { %v955_v56 = vadd.f32 %v2015_v46, %v954_v54 }
 0x4e4   : > { %v959_v58 = vsel %vm958_vm11, %v2015_v46, %v955_v56  ;;  %v1910_v46 = vld [vmem:[%s2692_s3 + $0x60] sm:$0xff] }
 0x4e5   : > { %v964_v60 = vsel %vm961_vm12, %v963_v57, %v959_v58 }
 0x4e6   : > { %v966_v61 = vmul.f32 %v2011_v27, %v964_v60 }
 0x4e8   : > { %1877 = vmatmul.msk.f32.vlgmr.msra.gmra.mxu2 %vm627_vm8, %v966_v61  ;;  %1887 = vmatmul.msk.f32.vlgmr.msra.gmra.mxu1 %vm473_vm0, %v2309_v59 }
 0x4f0   : > { %1888 = vmatmul.msk.f32.gmra.mxu1 %vm473_vm0, %v2318_v0  ;;  %1893 = vmatmul.msk.f32.vlgmr.msrb.gmra.mxu2 %vm473_vm0, %v2309_v59 }
 0x4f8   : > { %1894 = vmatmul.msk.f32.gmra.mxu2 %vm473_vm0, %v2318_v0 }
 0x55d   : > { %v987_v5 = vpop.f32.mrf.mxu1 }
 0x55e   : > { %1879 = vmatmul.msk.f32.vlgmr.msra.gmra.mxu3 %vm627_vm8, %v987_v5 }
 0x55f   : > { %1385 = vmatpush.msra.mxu3 %v1919_v4 }
 0x561   : > { %1386 = vmatpush.msra.mxu3 %v1918_v6 }
 0x563   : > { %1387 = vmatpush.msra.mxu3 %v1917_v7 }
 0x565   : > { %1388 = vmatpush.msra.mxu3 %v1916_v8  ;;  %v1095_v12 = vpop.f32.mrf.mxu1 }
 0x56b   : > { %v1010_v9 = vpop.f32.mrf.mxu2 }
 0x56c   : > { %1880 = vmatmul.msk.f32.gmra.mxu3 %vm627_vm8, %v1010_v9 }
 0x56d   : > { %v1098_v14 = vpop.f32.mrf.mxu1 }
 0x573   : > { %v1123_v11 = vpop.f32.mrf.mxu2 }
 0x574   : > { %1899 = vmatmul.msk.f32.vlgmr.msrb.gmra.mxu3 %vm473_vm0, %v2309_v59  ;;  %1901 = vmatpush.xpose.msk.msra.mxu0 %vm627_vm8, %v1123_v11 }
 0x577   : > { %1902 = vmatmul.msk.f32.vlgmr.msra.gmra.mxu0 %vm627_vm8, %v1095_v12 }
 0x57b   : > { %v1126_v13 = vpop.f32.mrf.mxu2 }
 0x57c   : > { %1900 = vmatmul.msk.f32.gmra.mxu3 %vm473_vm0, %v2318_v0  ;;  %1903 = vmatpush.xpose.msk.msrb.mxu1 %vm627_vm8, %v1126_v13 }
 0x57f   : > { %1904 = vmatmul.msk.f32.vlgmr.msrb.gmra.mxu1 %vm627_vm8, %v1098_v14 }
 0x580   : > { %1330 = vmatpush.msra.mxu1 %v1907_v15 }
 0x584   : > { %1920 = vmatmul.msk.f32.vlgmr.msra.gmra.mxu3 %vm473_vm0, %v2309_v59 }
 0x58c   : > { %1921 = vmatmul.msk.f32.gmra.mxu3 %vm473_vm0, %v2318_v0 }
 0x5e1   : > { %v2477_v18 = vpop.f32.mrf.mxu3 }
 0x5ef   : > { %v1041_v20 = vpop.f32.mrf.mxu3 }
 0x5f0   : > { %v2479_v21 = vadd.f32 %v1070_v19, %v1041_v20 }
 0x5f4   : > { %v1180_v22 = vpop.f32.mrf.mxu0 }
 0x5f5   : > { %v1209_v23 = vmul.f32 0.17677669, %v1180_v22 }
 0x5f7   : > { %v1151_v24 = vpop.f32.mrf.mxu3  ;;  %v1211_v25 = vsel %vm2350_vm9, %v1209_v23, -inf }
 0x5f8   : > { %1279 = vmatpush.msra.mxu2 %v1151_v24  ;;  %v1213_v26 = vsel %vm627_vm8, %v1211_v25, -inf }
 0x5f9   : > { %1214 = vmax.xlane.f32.xlu0 %v1213_v26 }
 0x5fa   : > { %1357 = vmatpush.msrb.mxu2 %v1913_v43 }
 0x5fc   : > { %v1206_v27 = vpop.f32.mrf.mxu1  ;;  %1358 = vmatpush.msrb.mxu2 %v1912_v44 }
 0x5fd   : > { %v1210_v28 = vmul.f32 0.17677669, %v1206_v27 }
 0x5fe   : > { %1359 = vmatpush.msrb.mxu2 %v1911_v45 }
 0x5ff   : > { %v1154_v29 = vpop.f32.mrf.mxu3  ;;  %v1212_v30 = vsel %vm2350_vm9, %v1210_v28, -inf }
 0x600   : > { %1302 = vmatpush.msrb.mxu0 %v1154_v29  ;;  %v1216_v31 = vsel %vm627_vm8, %v1212_v30, -inf  ;;  %1360 = vmatpush.msrb.mxu2 %v1910_v46 }
 0x601   : > { %1217 = vmax.xlane.f32.xlu1 %v1216_v31 }
 0x602   : > { %1413 = vmatpush.msra.mxu0 %v1925_v47 }
 0x604   : > { %1414 = vmatpush.msra.mxu0 %v1924_v48 }
 0x606   : > { %1415 = vmatpush.msra.mxu0 %v1923_v49 }
 0x607   : > { %v1390_v32 = vpop.f32.mrf.mxu3 }
 0x608   : > { %1928 = vmatpush.xpose.msk.msrb.mxu1 %vm627_vm8, %v1390_v32  ;;  %1416 = vmatpush.msra.mxu0 %v1922_v51 }
 0x60f   : > { %v1393_v6 = vpop.f32.mrf.mxu3 }
 0x66c   : > { %v1215_v33 = vpop.xlane.xlu0 %1214 }
 0x66d   : > { %v1219_v34 = vsub.f32 %v1211_v25, %v1215_v33 }
 0x66f   : > { %v1221_v35 = vmul.f32 1.442695, %v1219_v34 }
 0x671   : > { %2016 = vpow2.f32 %v1221_v35 }
 0x674   : > { %v1218_v36 = vpop.xlane.xlu1 %1217 }
 0x675   : > { %v1220_v37 = vsub.f32 %v1212_v30, %v1218_v36 }
 0x677   : > { %v2017_v38 = vpop.eup %2016  ;;  %v1223_v39 = vmul.f32 1.442695, %v1220_v37 }
 0x678   : > { %v1225_v40 = vsel %vm627_vm8, %v2017_v38, 0.0 }
 0x679   : > { %2018 = vpow2.f32 %v1223_v39  ;;  %1226 = vadd.xlane.f32.xlu2 %v1225_v40 }
 0x67f   : > { %v2019_v41 = vpop.eup %2018 }
 0x680   : > { %v1228_v42 = vsel %vm627_vm8, %v2019_v41, 0.0 }
 0x681   : > { %1229 = vadd.xlane.f32.xlu0 %v1228_v42 }
 0x6ec   : > { %v1227_v50 = vpop.xlane.xlu2 %1226 }
 0x6ed   : > { %2020 = vrcp.f32 %v1227_v50  ;;  %v1242_v56 = vand.u32 2147483648, %v1227_v50  ;;  %v1240_v58 = vand.u32 2147483647, %v1227_v50  ;;  %vm1236_vm14 = vweird.f32 %v1227_v50 }
 0x6ef   : > { %v1243_v62 = vor.u32 1.1754944e-38, %v1242_v56  ;;  %vm1241_vm1 = vcmp.eq.f32.partialorder %v1240_v58, 8.507059e+37 }
 0x6f3   : > { %v2021_v52 = vpop.eup %2020 }
 0x6f4   : > { %v1232_v53 = vmul.f32 %v2021_v52, %v1227_v50  ;;  %v1230_v54 = vpop.xlane.xlu0 %1229  ;;  %vm1237_vm13 = vweird.f32 %v2021_v52 }
 0x6f5   : > { %2022 = vrcp.f32 %v1230_v54  ;;  %vm1238_vm15 = vmor %vm1236_vm14, %vm1237_vm13  ;;  %v1256_v5 = vand.u32 2147483648, %v1230_v54  ;;  %v1254_v8 = vand.u32 2147483647, %v1230_v54  ;;  %vm1250_vm3 = vweird.f32 %v1230_v54 }
 0x6f6   : > { %v1233_v55 = vsub.f32 1.0, %v1232_v53 }
 0x6f7   : > { %v1257_v11 = vor.u32 1.1754944e-38, %v1256_v5  ;;  %vm1255_vm5 = vcmp.eq.f32.partialorder %v1254_v8, 8.507059e+37 }
 0x6f8   : > { %v1234_v57 = vmul.f32 %v2021_v52, %v1233_v55 }
 0x6fa   : > { %v1235_v60 = vadd.f32 %v2021_v52, %v1234_v57 }
 0x6fb   : > { %v2023_v61 = vpop.eup %2022 }
 0x6fc   : > { %v1239_v63 = vsel %vm1238_vm15, %v2021_v52, %v1235_v60  ;;  %v1246_v1 = vmul.f32 %v2023_v61, %v1230_v54  ;;  %vm1251_vm2 = vweird.f32 %v2023_v61 }
 0x6fd   : > { %v1244_v2 = vsel %vm1241_vm1, %v1243_v62, %v1239_v63  ;;  %vm1252_vm4 = vmor %vm1250_vm3, %vm1251_vm2 }
 0x6fe   : > { %v1247_v3 = vsub.f32 1.0, %v1246_v1  ;;  %v1259_v4 = vmul.f32 %v2017_v38, %v1244_v2 }
 0x700   : > { %v1248_v7 = vmul.f32 %v2023_v61, %v1247_v3  ;;  %1905 = vmatmul.msk.f32.vlgmr.msra.gmra.mxu2 %vm627_vm8, %v1259_v4  ;;  %v1934_v4 = vld [vmem:[%s2695_s6 + $0x18] sm:$0xff] }
 0x701   : > { %1930 = vmatpush.xpose.msk.msra.mxu2 %vm627_vm8, %v1393_v6 }
 0x702   : > { %v1249_v9 = vadd.f32 %v2023_v61, %v1248_v7  ;;  %v1989_v7 = vld [vmem:[%s2696_s7] ss:$0 sm:$0xff] }
 0x704   : > { %v1253_v12 = vsel %vm1252_vm4, %v2023_v61, %v1249_v9 }
 0x705   : > { %v1258_v13 = vsel %vm1255_vm5, %v1257_v11, %v1253_v12  ;;  %v2036_v12 = vld [vmem:[%s2232_s18] sm:$0xff] }
 0x706   : > { %v1260_v14 = vmul.f32 %v2019_v41, %v1258_v13 }
 0x708   : > { %1906 = vmatmul.msk.f32.vlgmr.msrb.gmra.mxu0 %vm627_vm8, %v1260_v14  ;;  %1914 = vmatmul.msk.f32.vlgmr.msrb.gmra.mxu2 %vm473_vm0, %v2309_v59 }
 0x710   : > { %1915 = vmatmul.msk.f32.gmra.mxu2 %vm473_vm0, %v2318_v0  ;;  %1926 = vmatmul.msk.f32.vlgmr.msra.gmra.mxu0 %vm473_vm0, %v2309_v59  ;;  %v1068_v59 = vadd.f32 %v2475_v17, %v2477_v18 }
 0x718   : > { %1927 = vmatmul.msk.f32.gmra.mxu0 %vm473_vm0, %v2318_v0 }
 0x783   : > { %v1281_v15 = vpop.f32.mrf.mxu2 }
 0x784   : > { %1908 = vmatmul.msk.f32.vlgmr.msra.gmra.mxu1 %vm627_vm8, %v1281_v15 }
 0x785   : > { %v1304_v19 = vpop.f32.mrf.mxu0  ;;  %1597 = vmatpush.msra.mxu1 %v1934_v4 }
 0x78b   : > { %v1362_v20 = vpop.f32.mrf.mxu2 }
 0x78c   : > { %1909 = vmatmul.msk.f32.gmra.mxu1 %vm627_vm8, %v1304_v19 }
 0x78d   : > { %v1418_v22 = vpop.f32.mrf.mxu0 }
 0x78e   : > { %1546 = vmatpush.msrb.mxu3 %v1418_v22  ;;  %v2037_v22 = vld [vmem:[%s2232_s18 + $0x8] sm:$0xff]  ;;  %s1770_s18 = sshll.u32 %s461_s19, 4  ;;  %s1771_s18 = int_to_ptr.vmem [resolvable:$true] %s1770_s18 }
 0x793   : > { %v1365_v23 = vpop.f32.mrf.mxu2 }
 0x794   : > { %1929 = vmatmul.msk.f32.vlgmr.msrb.gmra.mxu1 %vm627_vm8, %v1362_v20  ;;  %1931 = vmatmul.msk.f32.vlgmr.msra.gmra.mxu2 %vm627_vm8, %v1365_v23 }
 0x795   : > { %v1421_v24 = vpop.f32.mrf.mxu0 }
 0x796   : > { %1569 = vmatpush.msrb.mxu0 %v1421_v24 }
 0x801   : > { %v1332_v0 = vpop.f32.mrf.mxu1 }
 0x802   : > { %v2531_v25 = vadd.f32 %v1332_v0, %v1068_v59 }
 0x809   : > { %v1335_v26 = vpop.f32.mrf.mxu1 }
 0x80a   : > { %v2534_v27 = vadd.f32 %v1335_v26, %v2479_v21 }
 0x811   : > { %v1447_v28 = vpop.f32.mrf.mxu1 }
 0x812   : > { %v1476_v29 = vmul.f32 0.17677669, %v1447_v28 }
 0x814   : > { %v1478_v30 = vsel %vm2350_vm9, %v1476_v29, -inf }
 0x815   : > { %v1480_v31 = vsel %vm627_vm8, %v1478_v30, -inf }
 0x816   : > { %1481 = vmax.xlane.f32.xlu1 %v1480_v31 }
 0x817   : > { %v1473_v32 = vpop.f32.mrf.mxu2 }
 0x818   : > { %v1477_v33 = vmul.f32 0.17677669, %v1473_v32 }
 0x81a   : > { %v1479_v17 = vsel %vm2350_vm9, %v1477_v33, -inf  ;;  %v1674_v33 = vld [vmem:[%s2699_s10 + $0x18] sm:$0xff] }
 0x81b   : > { %v1483_v18 = vsel %vm627_vm8, %v1479_v17, -inf  ;;  %1697 = vmatpush.msrb.mxu2 %v1674_v33 }
 0x81c   : > { %1484 = vmax.xlane.f32.xlu2 %v1483_v18  ;;  %v1672_v18 = vld [vmem:[%s2699_s10 + $0x8] sm:$0xff] }
 0x889   : > { %v1482_v34 = vpop.xlane.xlu1 %1481 }
 0x88a   : > { %v1486_v35 = vsub.f32 %v1478_v30, %v1482_v34  ;;  %v1671_v34 = vld [vmem:[%s2699_s10] sm:$0xff] }
 0x88c   : > { %v1488_v21 = vmul.f32 1.442695, %v1486_v35 }
 0x88e   : > { %2024 = vpow2.f32 %v1488_v21 }
 0x88f   : > { %v1485_v36 = vpop.xlane.xlu2 %1484 }
 0x890   : > { %v1487_v37 = vsub.f32 %v1479_v17, %v1485_v36  ;;  %v1673_v17 = vld [vmem:[%s2699_s10 + $0x10] sm:$0xff] }
 0x891   : > { %1698 = vmatpush.msrb.mxu2 %v1673_v17 }
 0x892   : > { %v1490_v38 = vmul.f32 1.442695, %v1487_v37  ;;  %v1725_v37 = vld [vmem:[%s2701_s12 + $0x78] sm:$0xff] }
 0x893   : > { %1699 = vmatpush.msrb.mxu2 %v1672_v18  ;;  %1730 = vmatpush.msra.mxu3 %v1725_v37 }
 0x894   : > { %v2025_v39 = vpop.eup %2024  ;;  %2026 = vpow2.f32 %v1490_v38  ;;  %v1724_v38 = vld [vmem:[%s2701_s12 + $0x70] sm:$0xff] }
 0x895   : > { %v1492_v40 = vsel %vm627_vm8, %v2025_v39, 0.0  ;;  %1700 = vmatpush.msrb.mxu2 %v1671_v34  ;;  %1731 = vmatpush.msra.mxu3 %v1724_v38 }
 0x896   : > { %1493 = vadd.xlane.f32.xlu0 %v1492_v40 }
 0x89a   : > { %v2027_v41 = vpop.eup %2026 }
 0x89b   : > { %v1495_v42 = vsel %vm627_vm8, %v2027_v41, 0.0 }
 0x89c   : > { %1496 = vadd.xlane.f32.xlu1 %v1495_v42  ;;  %v1722_v42 = vld [vmem:[%s2701_s12 + $0x60] sm:$0xff] }
 0x909   : > { %v1494_v16 = vpop.xlane.xlu0 %1493 }
 0x90a   : > { %2028 = vrcp.f32 %v1494_v16  ;;  %v1509_v47 = vand.u32 2147483648, %v1494_v16  ;;  %v1507_v49 = vand.u32 2147483647, %v1494_v16  ;;  %vm1503_vm6 = vweird.f32 %v1494_v16 }
 0x90c   : > { %v1510_v53 = vor.u32 1.1754944e-38, %v1509_v47  ;;  %vm1508_vm10 = vcmp.eq.f32.partialorder %v1507_v49, 8.507059e+37  ;;  %v1718_v49 = vld [vmem:[%s2701_s12 + $0x40] sm:$0xff] }
 0x90f   : > { %v1497_v43 = vpop.xlane.xlu1 %1496 }
 0x910   : > { %v2029_v44 = vpop.eup %2028  ;;  %2030 = vrcp.f32 %v1497_v43  ;;  %v1523_v57 = vand.u32 2147483648, %v1497_v43  ;;  %v1521_v60 = vand.u32 2147483647, %v1497_v43  ;;  %vm1517_vm12 = vweird.f32 %v1497_v43 }
 0x911   : > { %v1499_v45 = vmul.f32 %v2029_v44, %v1494_v16  ;;  %vm1504_vm9 = vweird.f32 %v2029_v44 }
 0x912   : > { %vm1505_vm7 = vmor %vm1503_vm6, %vm1504_vm9  ;;  %v1524_v63 = vor.u32 1.1754944e-38, %v1523_v57  ;;  %vm1522_vm14 = vcmp.eq.f32.partialorder %v1521_v60, 8.507059e+37 }
 0x913   : > { %v1500_v46 = vsub.f32 1.0, %v1499_v45 }
 0x915   : > { %v1501_v48 = vmul.f32 %v2029_v44, %v1500_v46  ;;  %v1720_v46 = vld [vmem:[%s2701_s12 + $0x50] sm:$0xff] }
 0x916   : > { %v2031_v50 = vpop.eup %2030 }
 0x917   : > { %v1502_v51 = vadd.f32 %v2029_v44, %v1501_v48  ;;  %v1513_v52 = vmul.f32 %v2031_v50, %v1497_v43  ;;  %vm1518_vm11 = vweird.f32 %v2031_v50 }
 0x918   : > { %vm1519_vm13 = vmor %vm1517_vm12, %vm1518_vm11 }
 0x919   : > { %v1506_v54 = vsel %vm1505_vm7, %v2029_v44, %v1502_v51  ;;  %v1514_v55 = vsub.f32 1.0, %v1513_v52  ;;  %v1721_v44 = vld [vmem:[%s2701_s12 + $0x58] sm:$0xff] }
 0x91a   : > { %v1511_v56 = vsel %vm1508_vm10, %v1510_v53, %v1506_v54  ;;  %v1717_v52 = vld [vmem:[%s2701_s12 + $0x38] sm:$0xff] }
 0x91b   : > { %v1515_v58 = vmul.f32 %v2031_v50, %v1514_v55  ;;  %v1526_v61 = vmul.f32 %v2025_v39, %v1511_v56  ;;  %v1723_v39 = vld [vmem:[%s2701_s12 + $0x68] sm:$0xff]  ;;  %v1990_v55 = vld [vmem:[%s2697_s8] ss:$0 sm:$0xff]  ;;  %v1716_v56 = vld [vmem:[%s2701_s12 + $0x30] sm:$0xff] }
 0x91c   : > { %1732 = vmatpush.msra.mxu3 %v1723_v39 }
 0x91d   : > { %v1516_v62 = vadd.f32 %v2031_v50, %v1515_v58  ;;  %1932 = vmatmul.msk.f32.vlgmr.msrb.gmra.mxu3 %vm627_vm8, %v1526_v61  ;;  %v1991_v61 = vld [vmem:[%s2698_s9] ss:$0 sm:$0xff] }
 0x91e   : > { %1733 = vmatpush.msra.mxu3 %v1722_v42 }
 0x91f   : > { %v1520_v1 = vsel %vm1519_vm13, %v2031_v50, %v1516_v62  ;;  %v1715_v62 = vld [vmem:[%s2701_s12 + $0x28] sm:$0xff] }
 0x920   : > { %v1525_v2 = vsel %vm1522_vm14, %v1524_v63, %v1520_v1  ;;  %1734 = vmatpush.msra.mxu3 %v1721_v44 }
 0x921   : > { %v1527_v3 = vmul.f32 %v2027_v41, %v1525_v2  ;;  %v1714_v2 = vld [vmem:[%s2701_s12 + $0x20] sm:$0xff] }
 0x922   : > { %1735 = vmatpush.msra.mxu3 %v1720_v46 }
 0x923   : > { %1933 = vmatmul.msk.f32.vlgmr.msrb.gmra.mxu0 %vm627_vm8, %v1527_v3 }
 0x9a0   : > { %v1548_v5 = vpop.f32.mrf.mxu3  ;;  %v1571_v6 = vpop.f32.mrf.mxu0 }
 0x9a1   : > { %1935 = vmatmul.msk.f32.vlgmr.msra.gmra.mxu1 %vm627_vm8, %v1548_v5  ;;  %v1713_v5 = vld [vmem:[%s2701_s12 + $0x18] sm:$0xff] }
 0x9a9   : > { %1936 = vmatmul.msk.f32.gmra.mxu1 %vm627_vm8, %v1571_v6 }
 0xa1e   : > { %v1599_v8 = vpop.f32.mrf.mxu1 }
 0xa1f   : > { %v1605_v9 = vadd.f32 %v1599_v8, %v2531_v25 }
 0xa21   : > { %v1611_v11 = vadd.f32 %v1989_v7, %v1605_v9 }
 0xa23   : > { %v2556_v13 = vadd.f32 %v2036_v12, %v1611_v11  ;;  %v1712_v12 = vld [vmem:[%s2701_s12 + $0x10] sm:$0xff] }
 0xa25   : > { %v1617_v14 = vsel %vm473_vm0, %v2556_v13, 0.0 }
 0xa26   : > { %1618 = vadd.xlane.f32.xlu2 %v1617_v14  ;;  %v1602_v15 = vpop.f32.mrf.mxu1  ;;  %v1711_v14 = vld [vmem:[%s2701_s12 + $0x8] sm:$0xff] }
 0xa27   : > { %v1606_v19 = vadd.f32 %v1602_v15, %v2534_v27  ;;  %v1710_v15 = vld [vmem:[%s2701_s12] sm:$0xff] }
 0xa29   : > { %v1612_v20 = vadd.f32 %v1989_v7, %v1606_v19  ;;  %v1992_v19 = vld [vmem:[%s2700_s11] ss:$0 sm:$0xff] }
 0xa2b   : > { %v2562_v23 = vadd.f32 %v2037_v22, %v1612_v20 }
 0xa2d   : > { %v1620_v24 = vsel %vm473_vm0, %v2562_v23, 0.0 }
 0xa2e   : > { %1621 = vadd.xlane.f32.xlu0 %v1620_v24 }
 0xa99   : > { %v1619_v59 = vpop.xlane.xlu2 %1618 }
 0xa9a   : > { %v1623_v0 = vmul.f32 %v1619_v59, %v2238_v10 }
 0xa9c   : > { %v1625_v25 = vsub.f32 %v2556_v13, %v1623_v0 }
 0xa9e   : > { %v1627_v26 = vmul.f32 %v1625_v25, %v1625_v25 }
 0xaa0   : > { %v1629_v28 = vsel %vm473_vm0, %v1627_v26, 0.0  ;;  %v1993_v26 = vld [vmem:[%s2702_s13] ss:$0 sm:$0xff] }
 0xaa1   : > { %1630 = vadd.xlane.f32.xlu1 %v1629_v28  ;;  %v1622_v29 = vpop.xlane.xlu0 %1621 }
 0xaa2   : > { %v1624_v27 = vmul.f32 %v1622_v29, %v2238_v10 }
 0xaa4   : > { %v2571_v30 = vsub.f32 %v2562_v23, %v1624_v27 }
 0xaa6   : > { %v1628_v31 = vmul.f32 %v2571_v30, %v2571_v30 }
 0xaa8   : > { %v1632_v32 = vsel %vm473_vm0, %v1628_v31, 0.0 }
 0xaa9   : > { %1633 = vadd.xlane.f32.xlu2 %v1632_v32 }
 0xb14   : > { %v1631_v35 = vpop.xlane.xlu1 %1630 }
 0xb15   : > { %v1635_v21 = vmul.f32 %v1631_v35, %v2238_v10 }
 0xb17   : > { %v1637_v36 = vadd.f32 1e-05, %v1635_v21 }
 0xb19   : > { %2032 = vrsqrt.f32 %v1637_v36  ;;  %vm1645_vm15 = vweird.f32 %v1637_v36 }
 0xb1c   : > { %v1634_v40 = vpop.xlane.xlu2 %1633 }
 0xb1d   : > { %v1636_v41 = vmul.f32 %v1634_v40, %v2238_v10  ;;  %v1719_v10 = vld [vmem:[%s2701_s12 + $0x48] sm:$0xff] }
 0xb1e   : > { %1736 = vmatpush.msra.mxu3 %v1719_v10 }
 0xb1f   : > { %v2033_v16 = vpop.eup %2032  ;;  %v1638_v43 = vadd.f32 1e-05, %v1636_v41 }
 0xb20   : > { %v1640_v45 = vmul.f32 %v2033_v16, %v1637_v36  ;;  %vm1646_vm8 = vweird.f32 %v2033_v16  ;;  %1737 = vmatpush.msra.mxu3 %v1718_v49 }
 0xb21   : > { %2034 = vrsqrt.f32 %v1638_v43  ;;  %vm1647_vm1 = vmor %vm1645_vm15, %vm1646_vm8  ;;  %vm1655_vm3 = vweird.f32 %v1638_v43 }
 0xb22   : > { %v1641_v47 = vmul.f32 %v2033_v16, %v1640_v45  ;;  %1738 = vmatpush.msra.mxu3 %v1717_v52 }
 0xb24   : > { %v1642_v48 = vmul.f32 0.5, %v1641_v47  ;;  %1739 = vmatpush.msra.mxu3 %v1716_v56 }
 0xb26   : > { %v1643_v50 = vsub.f32 1.5, %v1642_v48  ;;  %1740 = vmatpush.msra.mxu3 %v1715_v62 }
 0xb27   : > { %v2035_v51 = vpop.eup %2034 }
 0xb28   : > { %v1644_v53 = vmul.f32 %v2033_v16, %v1643_v50  ;;  %v1650_v54 = vmul.f32 %v2035_v51, %v1638_v43  ;;  %vm1656_vm2 = vweird.f32 %v2035_v51  ;;  %1741 = vmatpush.msra.mxu3 %v1714_v2 }
 0xb29   : > { %vm1657_vm4 = vmor %vm1655_vm3, %vm1656_vm2 }
 0xb2a   : > { %v1648_v57 = vsel %vm1647_vm1, %v2033_v16, %v1644_v53  ;;  %v1651_v58 = vmul.f32 %v2035_v51, %v1650_v54  ;;  %1742 = vmatpush.msra.mxu3 %v1713_v5 }
 0xb2b   : > { %v1659_v60 = vmul.f32 %v1648_v57, %v1625_v25 }
 0xb2c   : > { %v1652_v63 = vmul.f32 0.5, %v1651_v58  ;;  %1743 = vmatpush.msra.mxu3 %v1712_v12 }
 0xb2d   : > { %v1664_v1 = vmul.f32 %v1990_v55, %v1659_v60 }
 0xb2e   : > { %v1653_v3 = vsub.f32 1.5, %v1652_v63  ;;  %1744 = vmatpush.msra.mxu3 %v1711_v14 }
 0xb2f   : > { %v1669_v4 = vadd.f32 %v1991_v61, %v1664_v1 }
 0xb30   : > { %v1654_v6 = vmul.f32 %v2035_v51, %v1653_v3  ;;  %1745 = vmatpush.msra.mxu3 %v1710_v15 }
 0xb31   : > { %1937 = vmatmul.msk.f32.vlgmr.msrb.gmra.mxu2 %vm473_vm0, %v1669_v4 }
 0xb32   : > { %v1658_v7 = vsel %vm1657_vm4, %v2035_v51, %v1654_v6 }
 0xb33   : > { %v1660_v8 = vmul.f32 %v1658_v7, %v2571_v30 }
 0xb35   : > { %v1665_v9 = vmul.f32 %v1990_v55, %v1660_v8 }
 0xb37   : > { %v1670_v11 = vadd.f32 %v1991_v61, %v1665_v9 }
 0xb39   : > { %1938 = vmatmul.msk.f32.gmra.mxu2 %vm473_vm0, %v1670_v11 }
 0xbb4   : > { %v1702_v20 = vpop.f32.mrf.mxu2 }
 0xbb5   : > { %v1703_v22 = vadd.f32 %v1992_v19, %v1702_v20 }
 0xbb7   : > { %v1708_v24 = vmax.f32 %v1703_v22, 0.0 }
 0xbb9   : > { %1746 = vmatmul.f32.vlgmr.msra.gmra.mxu3 %v1708_v24 }
 0xbbc   : > { %v1705_v59 = vpop.f32.mrf.mxu2 }
 0xbbd   : > { %v1706_v0 = vadd.f32 %v1992_v19, %v1705_v59 }
 0xbbf   : > { %v1709_v25 = vmax.f32 %v1706_v0, 0.0 }
 0xbc1   : > { %1749 = vmatmul.f32.gmra.mxu3 %v1709_v25 }
 0xc3c   : > { %v1747_v28 = vpop.f32.mrf.mxu3 }
 0xc3d   : > { %v1748_v29 = vadd.f32 %v1993_v26, %v1747_v28 }
 0xc3f   : > { %v1753_v27 = vadd.f32 %v1748_v29, %v2556_v13 }
 0xc41   : > { %1755 = vst.msk [vmem:[%s461_s19] sm:$0xff] %vm473_vm0, %v1753_v27 }
 0xc44   : > { %v1750_v30 = vpop.f32.mrf.mxu3 }
 0xc45   : > { %v1751_v31 = vadd.f32 %v1993_v26, %v1750_v30 }
 0xc47   : > { %v1754_v32 = vadd.f32 %v1751_v31, %v2562_v23 }
 0xc49   : > { %1756 = vst.msk [vmem:[%s461_s19 + $0x8] sm:$0xff] %vm473_vm0, %v1754_v32 }
 0xc4a   : > { %2065 = shalt.err (!%p2062_p3)
}
 0xc4b   : > { %s2103_s21 = smov 128   ;;  %s2104_s19 = smov 8  }
 0xc4c   : > { %1945 = dma.vmem_to_hbm [thread:$0]  (%p2218_p5), %s1771_s18, 256, %s1773_s20, %s1758_s17, %s2103_s21, %s2103_s21, %s2104_s19  }
 0xc4d PF: > { %p1951_p4 = scmp.ge.s32.totalorder %s2100_s16, 2  ;;  %s1787_s27 = sand.u32 1, %s2088_s29  }
 0xc4e   : > { %s1788_s28 = scalar_lea.sflag [#allocation3], %s1787_s27 }
 0xc4f   : > { %p1948_p7 = pnand %p1951_p4, %p2222_p6 }
 0xc51   : > { %p1949_p8 = pneg %p1948_p7 }
 0xc53   : > { %2083 = dma.done.wait (%p1949_p8), %s1788_s28, 256  }
 0xc54   : > { %2085 = vsyncadd (%p1949_p8), %s1788_s28, 4294967040  ;;  %s2716_s16 = sld [smem:[#allocation6_spill]]  ;;  %s2719_s29 = smov %s2092_s30 }
 0xc55   : > { %s2717_s25 = sld [smem:[#allocation5_spill]] }
 0xc56   : > { %s2718_s15 = sld [smem:[#allocation7_spill]] }
 0xc5a   : > { %p24_p9 = scmp.ge.s32.totalorder %s2716_s16, 4  }
 0xc5b   : > { %s2720_s30 = smov %s2717_s25 }
 0xc5c   :  { %26 = sbr.rel (!%p24_p9) target bundleno = 5 (0x5), region = 123 }
 0xc61   :  { %1794 = vsyncpa [#allocation3], 1 }
 0xc62   :  { %1796 = vsyncpa [#allocation3 + $0x1], 1 }

</bundles_post_ra>
